<compile_context>
chip_gen: v5e
topology: v5e:2x2
jax: 0.10.0
libtpu: 0.0.40
codegen_flags: <defaults>
</compile_context>

<pallas_src>
import jax
import jax.numpy as jnp
from jax.experimental import pallas as pl
from jax.experimental.pallas import tpu as pltpu


def _vmem_spec():
    return pl.BlockSpec(memory_space=pltpu.MemorySpace.VMEM)


# ------------------------- fused Pallas kernel ------------------------------


def fused_cnn_vit_kernel(p_res_ref, res_w_ref, res_b_ref, pool_ref,
                         p_vit_ref, vit_w_ref, vit_b_ref,
                         w1_res_ref, w1_vit_ref, b1_ref,
                         w2_ref, b2_ref, o_ref):
    """Fused EnhancedCNNViT forward.

    p_res_ref : (BP*Nw, K_res) bf16  im2col windows for the ResNet stand-in
    res_w_ref : (K_res, Dr)    bf16  conv-as-matmul weight
    res_b_ref : (1, Dr)        f32
    pool_ref  : (BP, BP*Nw)    bf16  block-diagonal 1/Nw global-avg-pool matrix
    p_vit_ref : (BP*Np, K_vit) bf16  patches for the ViT stand-in
    vit_w_ref : (K_vit, Dv)    bf16  patch-embedding weight
    vit_b_ref : (1, Dv)        f32
    w1_res_ref: (Dr, H)        bf16  classifier W1, res-feature columns
    w1_vit_ref: (Np*Dv, H)     bf16  classifier W1, vit-feature columns (flat)
    b1_ref    : (1, H)         f32
    w2_ref    : (H, Cpad)      bf16  classifier W2 (classes padded to 128)
    b2_ref    : (1, Cpad)      f32
    o_ref     : (BP, Cpad)     f32   sigmoid outputs
    """
    f32 = jnp.float32
    bf16 = jnp.bfloat16
    BP = pool_ref.shape[0]

    # --- ResNet-like branch: conv-as-matmul + bias + ReLU, M = BP*Nw = 512
    y = jnp.dot(p_res_ref[...], res_w_ref[...],
                preferred_element_type=f32)                 # (BP*Nw, Dr)
    y = jnp.maximum(y + res_b_ref[...], 0.0)
    # global average pool done on the MXU (block-diagonal 1/Nw matrix)
    res_feat = jnp.dot(pool_ref[...], y.astype(bf16),
                       preferred_element_type=f32)          # (BP, Dr)

    # --- ViT-like branch: patch-embedding tokens, M = BP*Np = 128
    tok = jnp.dot(p_vit_ref[...], vit_w_ref[...],
                  preferred_element_type=f32) + vit_b_ref[...]   # (BP*Np, Dv)
    # flatten tokens per batch row; single bf16 cast (small one-time relayout)
    tok_flat = tok.reshape(BP, w1_vit_ref.shape[0]).astype(bf16)  # (BP, Np*Dv)

    # --- classifier layer 1: concat folded into split-W1 accumulating matmuls
    h = (jnp.dot(res_feat.astype(bf16), w1_res_ref[...],
                 preferred_element_type=f32)
         + jnp.dot(tok_flat, w1_vit_ref[...],               # one K=2048 matmul
                   preferred_element_type=f32)
         + b1_ref[...])
    h = jnp.maximum(h, 0.0)                                  # ReLU

    # --- classifier layer 2 + numerically-stable sigmoid (EUP exp + recip)
    logits = jnp.dot(h.astype(bf16), w2_ref[...],
                     preferred_element_type=f32) + b2_ref[...]
    e = jnp.exp(-jnp.abs(logits))
    r = pl.reciprocal(1.0 + e, approx=True)
    sig = jnp.where(logits >= 0.0, r, e * r)
    o_ref[...] = jnp.clip(sig, 0.0, 1.0)


# ------------------------- JAX glue ----------------------------------------


def im2col_nonoverlap(x, patch):
    """Non-overlapping im2col for NCHW input; (C, kh, kw) flatten order
    (matches PyTorch conv weight.view(out, -1))."""
    B, C, H, W = x.shape
    hp, wp = H // patch, W // patch
    x = x.reshape(B, C, hp, patch, wp, patch)
    x = x.transpose(0, 2, 4, 1, 3, 5)                        # (B, hp, wp, C, p, p)
    return x.reshape(B, hp * wp, C * patch * patch)


def init_params(key, C, res_patch, res_dim, vit_patch, vit_dim, n_tokens,
                hidden, num_classes, padded_classes):
    ks = jax.random.split(key, 8)
    k_res = C * res_patch * res_patch
    k_vit = C * vit_patch * vit_patch
    combined = res_dim + n_tokens * vit_dim

    def w(k, fan_in, shape):          # bf16 matmul weights
        return (jax.random.normal(k, shape, jnp.float32)
                / jnp.sqrt(fan_in)).astype(jnp.bfloat16)

    def b(k, fan_in, shape):          # f32 biases (added post-accumulation)
        return jax.random.normal(k, shape, jnp.float32) / jnp.sqrt(fan_in)

    # classifier W1 split so the concat can be folded into two matmuls;
    # vit columns kept flat (n*Dv + d row order == torch flatten(start_dim=1))
    w1 = w(ks[3], combined, (combined, hidden))
    w1_res = w1[:res_dim]                                    # (Dr, H)
    w1_vit = w1[res_dim:]                                    # (Np*Dv, H)

    # classifier W2 / b2 padded from num_classes -> padded_classes lanes
    w2 = w(ks[5], hidden, (hidden, num_classes))
    w2_pad = jnp.zeros((hidden, padded_classes),
                       jnp.bfloat16).at[:, :num_classes].set(w2)
    b2 = b(ks[6], hidden, (1, num_classes))
    b2_pad = jnp.zeros((1, padded_classes),
                       jnp.float32).at[:, :num_classes].set(b2)

    return dict(
        res_w=w(ks[0], k_res, (k_res, res_dim)),
        res_b=jnp.zeros((1, res_dim), jnp.float32),
        vit_w=w(ks[1], k_vit, (k_vit, vit_dim)),
        vit_b=b(ks[2], k_vit, (1, vit_dim)),
        w1_res=w1_res,
        w1_vit=w1_vit,
        b1=b(ks[4], combined, (1, hidden)),
        w2=w2_pad,
        b2=b2_pad,
    )


def enhanced_cnn_vit_forward(x, params, *, res_patch, vit_patch, num_classes,
                             sublane=8):
    B = x.shape[0]
    BP = ((B + sublane - 1) // sublane) * sublane            # pad batch to 8 rows

    p_res = im2col_nonoverlap(x, res_patch)                   # (B, Nw, K_res)
    p_vit = im2col_nonoverlap(x, vit_patch)                   # (B, Np, K_vit)
    Nw, k_res = p_res.shape[1], p_res.shape[2]
    Np, k_vit = p_vit.shape[1], p_vit.shape[2]
    if BP != B:
        pad = ((0, BP - B), (0, 0), (0, 0))
        p_res = jnp.pad(p_res, pad)
        p_vit = jnp.pad(p_vit, pad)

    # collapse batch/window dims: free contiguous reshapes -> M=512 / M=128
    p_res2 = p_res.reshape(BP * Nw, k_res).astype(jnp.bfloat16)
    p_vit2 = p_vit.reshape(BP * Np, k_vit).astype(jnp.bfloat16)

    # block-diagonal global-avg-pool matrix (constant-folded under jit)
    pool = (jnp.repeat(jnp.eye(BP, dtype=jnp.float32), Nw, axis=1)
            * (1.0 / Nw)).astype(jnp.bfloat16)                # (BP, BP*Nw)

    padded_classes = params['w2'].shape[1]
    out = pl.pallas_call(
        fused_cnn_vit_kernel,
        out_shape=jax.ShapeDtypeStruct((BP, padded_classes), jnp.float32),
        in_specs=[_vmem_spec()] * 12,
        out_specs=_vmem_spec(),
    )(p_res2, params['res_w'], params['res_b'], pool,
      p_vit2, params['vit_w'], params['vit_b'],
      params['w1_res'], params['w1_vit'], params['b1'],
      params['w2'], params['b2'])

    return out[:B, :num_classes]


# ------------------------- main ---------------------------------------------


if __name__ == "__main__":
    # Small shapes consistent with the module's structure (scaled down from
    # 3x224x224 / 512 + 38400 combined features); lane-friendly dims.
    B, C, H, W = 2, 3, 32, 32
    res_patch, res_dim = 4, 128         # ResNet stand-in: 4x4 stride-4 stem
    vit_patch, vit_dim = 8, 128         # ViT stand-in: 8x8 patch embedding
    n_tokens = (H // vit_patch) * (W // vit_patch)            # 16 tokens
    hidden = 128                        # classifier hidden dim (scaled)
    num_classes, padded_classes = 9, 128

    key = jax.random.PRNGKey(0)
    kx, kp = jax.random.split(key)
    x = jax.random.normal(kx, (B, C, H, W), jnp.float32)
    params = init_params(kp, C, res_patch, res_dim, vit_patch, vit_dim,
                         n_tokens, hidden, num_classes, padded_classes)

    fwd = jax.jit(lambda xx: enhanced_cnn_vit_forward(
        xx, params, res_patch=res_patch, vit_patch=vit_patch,
        num_classes=num_classes))
    out = fwd(x)
    jax.block_until_ready(out)
    assert out.shape == (B, num_classes)
    assert bool(jnp.all((out >= 0.0) & (out <= 1.0)))         # sigmoid range
    print("KERNEL_OK")
</pallas_src>

<mosaic_0001>
module attributes {stable_mosaic.version = 11 : i64} {
  func.func @fused_cnn_vit_kernel(%arg0: memref<512x48xbf16, #tpu.memory_space<vmem>>, %arg1: memref<48x128xbf16, #tpu.memory_space<vmem>>, %arg2: memref<1x128xf32, #tpu.memory_space<vmem>>, %arg3: memref<8x512xbf16, #tpu.memory_space<vmem>>, %arg4: memref<128x192xbf16, #tpu.memory_space<vmem>>, %arg5: memref<192x128xbf16, #tpu.memory_space<vmem>>, %arg6: memref<1x128xf32, #tpu.memory_space<vmem>>, %arg7: memref<128x128xbf16, #tpu.memory_space<vmem>>, %arg8: memref<2048x128xbf16, #tpu.memory_space<vmem>>, %arg9: memref<1x128xf32, #tpu.memory_space<vmem>>, %arg10: memref<128x128xbf16, #tpu.memory_space<vmem>>, %arg11: memref<1x128xf32, #tpu.memory_space<vmem>>, %arg12: memref<8x128xf32, #tpu.memory_space<vmem>>) attributes {dimension_semantics = [], scalar_prefetch = 0 : i64, scratch_operands = 0 : i64, tpu.core_type = #tpu.core_type<tc>} {
    %c0 = arith.constant 0 : index
    %c0_0 = arith.constant 0 : index
    %0 = vector.load %arg0[%c0, %c0_0] : memref<512x48xbf16, #tpu.memory_space<vmem>>, vector<512x48xbf16>
    %c0_1 = arith.constant 0 : index
    %c0_2 = arith.constant 0 : index
    %1 = vector.load %arg1[%c0_1, %c0_2] : memref<48x128xbf16, #tpu.memory_space<vmem>>, vector<48x128xbf16>
    %cst = arith.constant dense<0.000000e+00> : vector<512x128xf32>
    %2 = tpu.matmul %0, %1, %cst {dimension_numbers = #tpu.dot_dimension_numbers<[1], [0], [0], [1], [0, 0, 1, 1], [], []>} : vector<512x48xbf16>, vector<48x128xbf16>, vector<512x128xf32> -> vector<512x128xf32>
    %c0_3 = arith.constant 0 : index
    %c0_4 = arith.constant 0 : index
    %3 = vector.load %arg2[%c0_3, %c0_4] : memref<1x128xf32, #tpu.memory_space<vmem>>, vector<1x128xf32>
    %4 = vector.broadcast %3 : vector<1x128xf32> to vector<512x128xf32>
    %5 = arith.addf %2, %4 : vector<512x128xf32>
    %cst_5 = arith.constant 0.000000e+00 : f32
    %6 = vector.broadcast %cst_5 : f32 to vector<512x128xf32>
    %7 = arith.maximumf %5, %6 : vector<512x128xf32>
    %c0_6 = arith.constant 0 : index
    %c0_7 = arith.constant 0 : index
    %8 = vector.load %arg3[%c0_6, %c0_7] : memref<8x512xbf16, #tpu.memory_space<vmem>>, vector<8x512xbf16>
    %9 = arith.truncf %7 : vector<512x128xf32> to vector<512x128xbf16>
    %cst_8 = arith.constant dense<0.000000e+00> : vector<8x128xf32>
    %10 = tpu.matmul %8, %9, %cst_8 {dimension_numbers = #tpu.dot_dimension_numbers<[1], [0], [0], [1], [0, 0, 1, 1], [], []>} : vector<8x512xbf16>, vector<512x128xbf16>, vector<8x128xf32> -> vector<8x128xf32>
    %c0_9 = arith.constant 0 : index
    %c0_10 = arith.constant 0 : index
    %11 = vector.load %arg4[%c0_9, %c0_10] : memref<128x192xbf16, #tpu.memory_space<vmem>>, vector<128x192xbf16>
    %c0_11 = arith.constant 0 : index
    %c0_12 = arith.constant 0 : index
    %12 = vector.load %arg5[%c0_11, %c0_12] : memref<192x128xbf16, #tpu.memory_space<vmem>>, vector<192x128xbf16>
    %cst_13 = arith.constant dense<0.000000e+00> : vector<128x128xf32>
    %13 = tpu.matmul %11, %12, %cst_13 {dimension_numbers = #tpu.dot_dimension_numbers<[1], [0], [0], [1], [0, 0, 1, 1], [], []>} : vector<128x192xbf16>, vector<192x128xbf16>, vector<128x128xf32> -> vector<128x128xf32>
    %c0_14 = arith.constant 0 : index
    %c0_15 = arith.constant 0 : index
    %14 = vector.load %arg6[%c0_14, %c0_15] : memref<1x128xf32, #tpu.memory_space<vmem>>, vector<1x128xf32>
    %15 = vector.broadcast %14 : vector<1x128xf32> to vector<128x128xf32>
    %16 = arith.addf %13, %15 : vector<128x128xf32>
    %17 = vector.shape_cast %16 : vector<128x128xf32> to vector<8x2048xf32>
    %18 = arith.truncf %17 : vector<8x2048xf32> to vector<8x2048xbf16>
    %19 = arith.truncf %10 : vector<8x128xf32> to vector<8x128xbf16>
    %c0_16 = arith.constant 0 : index
    %c0_17 = arith.constant 0 : index
    %20 = vector.load %arg7[%c0_16, %c0_17] : memref<128x128xbf16, #tpu.memory_space<vmem>>, vector<128x128xbf16>
    %cst_18 = arith.constant dense<0.000000e+00> : vector<8x128xf32>
    %21 = tpu.matmul %19, %20, %cst_18 {dimension_numbers = #tpu.dot_dimension_numbers<[1], [0], [0], [1], [0, 0, 1, 1], [], []>} : vector<8x128xbf16>, vector<128x128xbf16>, vector<8x128xf32> -> vector<8x128xf32>
    %c0_19 = arith.constant 0 : index
    %c0_20 = arith.constant 0 : index
    %22 = vector.load %arg8[%c0_19, %c0_20] : memref<2048x128xbf16, #tpu.memory_space<vmem>>, vector<2048x128xbf16>
    %cst_21 = arith.constant dense<0.000000e+00> : vector<8x128xf32>
    %23 = tpu.matmul %18, %22, %cst_21 {dimension_numbers = #tpu.dot_dimension_numbers<[1], [0], [0], [1], [0, 0, 1, 1], [], []>} : vector<8x2048xbf16>, vector<2048x128xbf16>, vector<8x128xf32> -> vector<8x128xf32>
    %24 = arith.addf %21, %23 : vector<8x128xf32>
    %c0_22 = arith.constant 0 : index
    %c0_23 = arith.constant 0 : index
    %25 = vector.load %arg9[%c0_22, %c0_23] : memref<1x128xf32, #tpu.memory_space<vmem>>, vector<1x128xf32>
    %26 = vector.broadcast %25 : vector<1x128xf32> to vector<8x128xf32>
    %27 = arith.addf %24, %26 : vector<8x128xf32>
    %cst_24 = arith.constant 0.000000e+00 : f32
    %28 = vector.broadcast %cst_24 : f32 to vector<8x128xf32>
    %29 = arith.maximumf %27, %28 : vector<8x128xf32>
    %30 = arith.truncf %29 : vector<8x128xf32> to vector<8x128xbf16>
    %c0_25 = arith.constant 0 : index
    %c0_26 = arith.constant 0 : index
    %31 = vector.load %arg10[%c0_25, %c0_26] : memref<128x128xbf16, #tpu.memory_space<vmem>>, vector<128x128xbf16>
    %cst_27 = arith.constant dense<0.000000e+00> : vector<8x128xf32>
    %32 = tpu.matmul %30, %31, %cst_27 {dimension_numbers = #tpu.dot_dimension_numbers<[1], [0], [0], [1], [0, 0, 1, 1], [], []>} : vector<8x128xbf16>, vector<128x128xbf16>, vector<8x128xf32> -> vector<8x128xf32>
    %c0_28 = arith.constant 0 : index
    %c0_29 = arith.constant 0 : index
    %33 = vector.load %arg11[%c0_28, %c0_29] : memref<1x128xf32, #tpu.memory_space<vmem>>, vector<1x128xf32>
    %34 = vector.broadcast %33 : vector<1x128xf32> to vector<8x128xf32>
    %35 = arith.addf %32, %34 : vector<8x128xf32>
    %36 = math.absf %35 : vector<8x128xf32>
    %cst_30 = arith.constant 0.000000e+00 : f32
    %37 = vector.broadcast %cst_30 : f32 to vector<8x128xf32>
    %38 = arith.subf %37, %36 : vector<8x128xf32>
    %39 = math.exp %38 : vector<8x128xf32>
    %cst_31 = arith.constant 1.000000e+00 : f32
    %40 = vector.broadcast %cst_31 : f32 to vector<8x128xf32>
    %41 = arith.addf %40, %39 : vector<8x128xf32>
    %42 = tpu.reciprocal %41 {approx = true} : vector<8x128xf32> -> vector<8x128xf32>
    %cst_32 = arith.constant 0.000000e+00 : f32
    %43 = vector.broadcast %cst_32 : f32 to vector<8x128xf32>
    %44 = arith.cmpf oge, %35, %43 : vector<8x128xf32>
    %45 = arith.mulf %39, %42 : vector<8x128xf32>
    %46 = arith.select %44, %42, %45 : vector<8x128xi1>, vector<8x128xf32>
    %cst_33 = arith.constant 0.000000e+00 : f32
    %cst_34 = arith.constant 1.000000e+00 : f32
    %47 = vector.broadcast %cst_33 : f32 to vector<8x128xf32>
    %48 = arith.maximumf %47, %46 : vector<8x128xf32>
    %49 = vector.broadcast %cst_34 : f32 to vector<8x128xf32>
    %50 = arith.minimumf %49, %48 : vector<8x128xf32>
    %c0_35 = arith.constant 0 : index
    %c0_36 = arith.constant 0 : index
    %51 = vector.load %arg12[%c0_35, %c0_36] : memref<8x128xf32, #tpu.memory_space<vmem>>, vector<8x128xf32>
    tpu.vector_store %arg12[%c0_35, %c0_36], %50 {strides = array<i32>} : memref<8x128xf32, #tpu.memory_space<vmem>>, vector<8x128xf32>,
    return
  }
}

</mosaic_0001>

<bundles_post_ra>
// kernel: _lambda_.1
= control target key start
LH: loop header
LB: loop body
LE: loop exit
PB: predicated region body
PF: predicated region fallthrough
CT: control target
= control target key end

     0   :  { %vm294_vm0 = vcmask 392192   ;;  %vm912_vm1 = vcmask 523264   ;;  %s4595_s1 = inlined_call_operand.vmem [shape: bf16[48,128], index: 1, kind: input, shape index: {}]   ;;  %s4596_s2 = inlined_call_operand.vmem [shape: f32[1,128], index: 2, kind: input, shape index: {}]   ;;  %s4597_s0 = inlined_call_operand.vmem [shape: bf16[512,48], index: 0, kind: input, shape index: {}]   ;;  %s4598_s5 = inlined_call_operand.vmem [shape: bf16[192,128], index: 5, kind: input, shape index: {}]   ;;  %s4599_s3 = inlined_call_operand.vmem [shape: bf16[8,512], index: 3, kind: input, shape index: {}]   ;;  %s4600_s4 = inlined_call_operand.vmem [shape: bf16[128,192], index: 4, kind: input, shape index: {}]   ;;  %s4601_s6 = inlined_call_operand.vmem [shape: f32[1,128], index: 6, kind: input, shape index: {}]   ;;  %s4602_s8 = inlined_call_operand.vmem [shape: bf16[2048,128], index: 8, kind: input, shape index: {}]   ;;  %s4603_s7 = inlined_call_operand.vmem [shape: bf16[128,128], index: 7, kind: input, shape index: {}]   ;;  %s4604_s9 = inlined_call_operand.vmem [shape: f32[1,128], index: 9, kind: input, shape index: {}]   ;;  %s4605_s11 = inlined_call_operand.vmem [shape: f32[1,128], index: 11, kind: input, shape index: {}]   ;;  %s4606_s10 = inlined_call_operand.vmem [shape: bf16[128,128], index: 10, kind: input, shape index: {}]   ;;  %s4607_s12 = inlined_call_operand.vmem [shape: f32[8,128], index: 12, kind: output, shape index: {}]  }
   0x1   :  { %v3438_v0 = vld [vmem:[%s4595_s1 + $0x10] sm:$0xff]  ;;  %v3437_v1 = vld [vmem:[%s4595_s1 + $0x8] sm:$0xff]  ;;  %v3436_v2 = vld [vmem:[%s4595_s1] sm:$0xff] }
   0x2   :  { %396 = vmatpush.bf16.msra.mxu0 %v3438_v0  ;;  %3611 = vmatpush.bf16.msra.mxu1 %v3438_v0  ;;  %v3404_v3 = vld [vmem:[%s4597_s0] sm:$0xff]  ;;  %v3405_v4 = vld [vmem:[%s4597_s0 + $0x8] sm:$0xff]  ;;  %v3406_v5 = vld [vmem:[%s4597_s0 + $0x10] sm:$0xff] }
   0x3   :  { %3612 = vmatpush.bf16.msra.mxu3 %v3438_v0  ;;  %v3407_v6 = vld [vmem:[%s4597_s0 + $0x18] sm:$0xff]  ;;  %v3408_v7 = vld [vmem:[%s4597_s0 + $0x20] sm:$0xff]  ;;  %v3409_v8 = vld [vmem:[%s4597_s0 + $0x28] sm:$0xff] }
   0x4   :  { %v3410_v9 = vld [vmem:[%s4597_s0 + $0x30] sm:$0xff]  ;;  %v3411_v10 = vld [vmem:[%s4597_s0 + $0x38] sm:$0xff]  ;;  %v3412_v11 = vld [vmem:[%s4597_s0 + $0x40] sm:$0xff] }
   0x5   :  { %v3737_v13 = vld [vmem:[%s4596_s2] ss:$0 sm:$0xff]  ;;  %v3413_v20 = vld [vmem:[%s4597_s0 + $0x48] sm:$0xff]  ;;  %v3414_v28 = vld [vmem:[%s4597_s0 + $0x50] sm:$0xff] }
   0x6   :  { %397 = vmatpush.bf16.msra.mxu0 %v3437_v1  ;;  %3613 = vmatpush.bf16.msra.mxu1 %v3437_v1  ;;  %v3415_v36 = vld [vmem:[%s4597_s0 + $0x58] sm:$0xff]  ;;  %v3416_v44 = vld [vmem:[%s4597_s0 + $0x60] sm:$0xff]  ;;  %v3417_v47 = vld [vmem:[%s4597_s0 + $0x68] sm:$0xff] }
   0x7   :  { %3614 = vmatpush.bf16.msra.mxu3 %v3437_v1  ;;  %v3418_v50 = vld [vmem:[%s4597_s0 + $0x70] sm:$0xff]  ;;  %v3419_v53 = vld [vmem:[%s4597_s0 + $0x78] sm:$0xff] }
   0xa   :  { %398 = vmatpush.bf16.msra.mxu0 %v3436_v2  ;;  %3615 = vmatpush.bf16.msra.mxu1 %v3436_v2 }
   0xb   :  { %3616 = vmatpush.bf16.msra.mxu3 %v3436_v2 }
   0xd   :  { %2676 = vmatmul.msk.bf16.vlgmr.msra.gmra.mxu0 %vm294_vm0, %v3404_v3  ;;  %v3420_v3 = vld [vmem:[%s4597_s0 + $0x80] sm:$0xff] }
  0x1d   :  { %2677 = vmatmul.msk.bf16.gmra.mxu0 %vm294_vm0, %v3405_v4  ;;  %v3431_v4 = vld [vmem:[%s4597_s0 + $0xd8] sm:$0xff] }
  0x1e   :  { %2703 = vmatmul.msk.bf16.vlgmr.msra.gmra.mxu3 %vm294_vm0, %v3431_v4 }
  0x2d   :  { %2678 = vmatmul.msk.bf16.gmra.mxu0 %vm294_vm0, %v3406_v5 }
  0x3d   :  { %2679 = vmatmul.msk.bf16.gmra.mxu0 %vm294_vm0, %v3407_v6 }
  0x4d   :  { %2680 = vmatmul.msk.bf16.gmra.mxu0 %vm294_vm0, %v3408_v7 }
  0x5d   :  { %2681 = vmatmul.msk.bf16.gmra.mxu0 %vm294_vm0, %v3409_v8 }
  0x6d   :  { %2682 = vmatmul.msk.bf16.gmra.mxu0 %vm294_vm0, %v3410_v9 }
  0x7d   :  { %2683 = vmatmul.msk.bf16.gmra.mxu0 %vm294_vm0, %v3411_v10 }
  0x8a   :  { %v400_v12 = vpop.f32.mrf.mxu0 }
  0x8b   :  { %v401_v14 = vadd.f32 %v3737_v13, %v400_v12 }
  0x8d   :  { %2684 = vmatmul.msk.bf16.gmra.mxu0 %vm294_vm0, %v3412_v11  ;;  %v560_v17 = vmax.f32 %v401_v14, 0.0 }
  0x92   :  { %v402_v15 = vpop.f32.mrf.mxu0 }
  0x93   :  { %v403_v16 = vadd.f32 %v3737_v13, %v402_v15 }
  0x95   :  { %v561_v18 = vmax.f32 %v403_v16, 0.0 }
  0x97   :  { %v3742_v19 = vpack.c.bf16 %v561_v18, %v560_v17 }
  0x9a   :  { %v405_v21 = vpop.f32.mrf.mxu0 }
  0x9b   :  { %v406_v22 = vadd.f32 %v3737_v13, %v405_v21 }
  0x9d   :  { %2685 = vmatmul.msk.bf16.gmra.mxu0 %vm294_vm0, %v3413_v20  ;;  %v562_v25 = vmax.f32 %v406_v22, 0.0 }
  0xa2   :  { %v407_v23 = vpop.f32.mrf.mxu0 }
  0xa3   :  { %v408_v24 = vadd.f32 %v3737_v13, %v407_v23  ;;  %v3421_v23 = vld [vmem:[%s4597_s0 + $0x88] sm:$0xff] }
  0xa5   :  { %v563_v26 = vmax.f32 %v408_v24, 0.0  ;;  %v3432_v24 = vld [vmem:[%s4597_s0 + $0xe0] sm:$0xff] }
  0xa6   :  { %2704 = vmatmul.msk.bf16.gmra.mxu3 %vm294_vm0, %v3432_v24 }
  0xa7   :  { %v3750_v27 = vpack.c.bf16 %v563_v26, %v562_v25 }
  0xaa   :  { %v410_v29 = vpop.f32.mrf.mxu0 }
  0xab   :  { %v411_v30 = vadd.f32 %v3737_v13, %v410_v29 }
  0xad   :  { %2686 = vmatmul.msk.bf16.gmra.mxu0 %vm294_vm0, %v3414_v28  ;;  %v564_v33 = vmax.f32 %v411_v30, 0.0 }
  0xb2   :  { %v412_v31 = vpop.f32.mrf.mxu0 }
  0xb3   :  { %v413_v32 = vadd.f32 %v3737_v13, %v412_v31 }
  0xb5   :  { %v565_v34 = vmax.f32 %v413_v32, 0.0 }
  0xb7   :  { %v3758_v35 = vpack.c.bf16 %v565_v34, %v564_v33  ;;  %v3422_v33 = vld [vmem:[%s4597_s0 + $0x90] sm:$0xff]  ;;  %v3433_v34 = vld [vmem:[%s4597_s0 + $0xe8] sm:$0xff] }
  0xb8   :  { %2705 = vmatmul.msk.bf16.gmra.mxu3 %vm294_vm0, %v3433_v34 }
  0xba   :  { %v415_v37 = vpop.f32.mrf.mxu0 }
  0xbb   :  { %v416_v38 = vadd.f32 %v3737_v13, %v415_v37  ;;  %v3427_v37 = vld [vmem:[%s4597_s0 + $0xb8] sm:$0xff] }
  0xbc   :  { %2699 = vmatmul.msk.bf16.vlgmr.msra.gmra.mxu1 %vm294_vm0, %v3427_v37 }
  0xbd   :  { %2687 = vmatmul.msk.bf16.gmra.mxu0 %vm294_vm0, %v3415_v36  ;;  %v566_v41 = vmax.f32 %v416_v38, 0.0 }
  0xc2   :  { %v417_v39 = vpop.f32.mrf.mxu0 }
  0xc3   :  { %v418_v40 = vadd.f32 %v3737_v13, %v417_v39 }
  0xc5   :  { %v567_v42 = vmax.f32 %v418_v40, 0.0 }
  0xc7   :  { %v629_v43 = vpack.c.bf16 %v567_v42, %v566_v41  ;;  %v3423_v41 = vld [vmem:[%s4597_s0 + $0x98] sm:$0xff]  ;;  %v3434_v42 = vld [vmem:[%s4597_s0 + $0xf0] sm:$0xff] }
  0xc8   :  { %2706 = vmatmul.msk.bf16.gmra.mxu3 %vm294_vm0, %v3434_v42 }
  0xca   :  { %v420_v45 = vpop.f32.mrf.mxu0 }
  0xcb   :  { %v421_v9 = vadd.f32 %v3737_v13, %v420_v45 }
  0xcd   :  { %2688 = vmatmul.msk.bf16.gmra.mxu0 %vm294_vm0, %v3416_v44  ;;  %v568_v14 = vmax.f32 %v421_v9, 0.0 }
  0xd2   :  { %v422_v46 = vpop.f32.mrf.mxu0 }
  0xd3   :  { %v423_v6 = vadd.f32 %v3737_v13, %v422_v46 }
  0xd5   :  { %v569_v11 = vmax.f32 %v423_v6, 0.0 }
  0xd7   :  { %v630_v18 = vpack.c.bf16 %v569_v11, %v568_v14 }
  0xda   :  { %v425_v48 = vpop.f32.mrf.mxu0 }
  0xdb   :  { %v426_v1 = vadd.f32 %v3737_v13, %v425_v48 }
  0xdd   :  { %2689 = vmatmul.msk.bf16.gmra.mxu0 %vm294_vm0, %v3417_v47  ;;  %v570_v10 = vmax.f32 %v426_v1, 0.0  ;;  %v3428_v47 = vld [vmem:[%s4597_s0 + $0xc0] sm:$0xff] }
  0xde   :  { %2700 = vmatmul.msk.bf16.gmra.mxu1 %vm294_vm0, %v3428_v47 }
  0xe2   :  { %v427_v49 = vpop.f32.mrf.mxu0 }
  0xe3   :  { %v428_v62 = vadd.f32 %v3737_v13, %v427_v49 }
  0xe5   :  { %v571_v7 = vmax.f32 %v428_v62, 0.0 }
  0xe7   :  { %v631_v12 = vpack.c.bf16 %v571_v7, %v570_v10 }
  0xea   :  { %v430_v51 = vpop.f32.mrf.mxu0 }
  0xeb   :  { %v431_v59 = vadd.f32 %v3737_v13, %v430_v51  ;;  %v3424_v51 = vld [vmem:[%s4597_s0 + $0xa0] sm:$0xff] }
  0xed   :  { %2690 = vmatmul.msk.bf16.gmra.mxu0 %vm294_vm0, %v3418_v50  ;;  %v572_v2 = vmax.f32 %v431_v59, 0.0  ;;  %v3430_v59 = vld [vmem:[%s4597_s0 + $0xd0] sm:$0xff] }
  0xf2   :  { %v432_v52 = vpop.f32.mrf.mxu0 }
  0xf3   :  { %v433_v57 = vadd.f32 %v3737_v13, %v432_v52  ;;  %v3435_v52 = vld [vmem:[%s4597_s0 + $0xf8] sm:$0xff] }
  0xf4   :  { %2707 = vmatmul.msk.bf16.gmra.mxu3 %vm294_vm0, %v3435_v52 }
  0xf5   :  { %v573_v63 = vmax.f32 %v433_v57, 0.0 }
  0xf7   :  { %v632_v8 = vpack.c.bf16 %v573_v63, %v572_v2 }
  0xfa   :  { %v435_v54 = vpop.f32.mrf.mxu0 }
  0xfb   :  { %v436_v55 = vadd.f32 %v3737_v13, %v435_v54 }
  0xfd   :  { %2691 = vmatmul.msk.bf16.gmra.mxu0 %vm294_vm0, %v3419_v53  ;;  %v574_v60 = vmax.f32 %v436_v55, 0.0  ;;  %v3429_v55 = vld [vmem:[%s4597_s0 + $0xc8] sm:$0xff] }
  0xfe   :  { %2701 = vmatmul.msk.bf16.gmra.mxu1 %vm294_vm0, %v3429_v55 }
 0x102   :  { %v437_v56 = vpop.f32.mrf.mxu0 }
 0x103   :  { %v438_v58 = vadd.f32 %v3737_v13, %v437_v56  ;;  %v3425_v56 = vld [vmem:[%s4597_s0 + $0xa8] sm:$0xff] }
 0x105   :  { %v575_v61 = vmax.f32 %v438_v58, 0.0 }
 0x107   :  { %v633_v0 = vpack.c.bf16 %v575_v61, %v574_v60  ;;  %v3426_v60 = vld [vmem:[%s4597_s0 + $0xb0] sm:$0xff] }
 0x109   :  { %672 = vmatpush.bf16.msrb.mxu1 %v633_v0 }
 0x10a   :  { %v440_v5 = vpop.f32.mrf.mxu0 }
 0x10b   :  { %v441_v15 = vadd.f32 %v3737_v13, %v440_v5 }
 0x10d   :  { %2692 = vmatmul.msk.bf16.gmra.mxu0 %vm294_vm0, %v3420_v3  ;;  %673 = vmatpush.bf16.msrb.mxu1 %v632_v8  ;;  %v576_v20 = vmax.f32 %v441_v15, 0.0 }
 0x10e   :  { %2702 = vmatmul.msk.bf16.gmra.mxu1 %vm294_vm0, %v3430_v59 }
 0x111   :  { %674 = vmatpush.bf16.msrb.mxu1 %v631_v12 }
 0x112   :  { %v442_v16 = vpop.f32.mrf.mxu0 }
 0x113   :  { %v443_v17 = vadd.f32 %v3737_v13, %v442_v16 }
 0x115   :  { %v577_v21 = vmax.f32 %v443_v17, 0.0  ;;  %675 = vmatpush.bf16.msrb.mxu1 %v630_v18 }
 0x117   :  { %v3800_v22 = vpack.c.bf16 %v577_v21, %v576_v20  ;;  %v3879_v20 = vpop.f32.mrf.mxu3 }
 0x119   :  { %676 = vmatpush.bf16.msrb.mxu1 %v629_v43 }
 0x11a   :  { %v445_v25 = vpop.f32.mrf.mxu0 }
 0x11b   :  { %v446_v26 = vadd.f32 %v3737_v13, %v445_v25 }
 0x11d   :  { %2693 = vmatmul.msk.bf16.gmra.mxu0 %vm294_vm0, %v3421_v23  ;;  %677 = vmatpush.bf16.msrb.mxu1 %v3758_v35  ;;  %v578_v30 = vmax.f32 %v446_v26, 0.0 }
 0x121   :  { %678 = vmatpush.bf16.msrb.mxu1 %v3750_v27 }
 0x122   :  { %v447_v28 = vpop.f32.mrf.mxu0 }
 0x123   :  { %v448_v29 = vadd.f32 %v3737_v13, %v447_v28 }
 0x125   :  { %v579_v31 = vmax.f32 %v448_v29, 0.0  ;;  %679 = vmatpush.bf16.msrb.mxu1 %v3742_v19 }
 0x127   :  { %v3815_v32 = vpack.c.bf16 %v579_v31, %v578_v30 }
 0x12a   :  { %v450_v35 = vpop.f32.mrf.mxu0 }
 0x12b   :  { %v451_v27 = vadd.f32 %v3737_v13, %v450_v35 }
 0x12d   :  { %2694 = vmatmul.msk.bf16.gmra.mxu0 %vm294_vm0, %v3422_v33  ;;  %v580_v38 = vmax.f32 %v451_v27, 0.0  ;;  %v3883_v33 = vpop.f32.mrf.mxu3 }
 0x132   :  { %v452_v36 = vpop.f32.mrf.mxu0 }
 0x133   :  { %v453_v19 = vadd.f32 %v3737_v13, %v452_v36 }
 0x135   :  { %v581_v39 = vmax.f32 %v453_v19, 0.0  ;;  %v540_v27 = vpop.f32.mrf.mxu3 }
 0x137   :  { %v3831_v40 = vpack.c.bf16 %v581_v39, %v580_v38 }
 0x13a   :  { %v455_v43 = vpop.f32.mrf.mxu0 }
 0x13b   :  { %v456_v44 = vadd.f32 %v3737_v13, %v455_v43 }
 0x13d   :  { %2695 = vmatmul.msk.bf16.gmra.mxu0 %vm294_vm0, %v3423_v41  ;;  %v582_v48 = vmax.f32 %v456_v44, 0.0  ;;  %v542_v41 = vpop.f32.mrf.mxu3 }
 0x142   :  { %v457_v45 = vpop.f32.mrf.mxu0 }
 0x143   :  { %v458_v46 = vadd.f32 %v3737_v13, %v457_v45 }
 0x145   :  { %v583_v49 = vmax.f32 %v458_v46, 0.0  ;;  %v545_v44 = vpop.f32.mrf.mxu3  ;;  %v515_v46 = vpop.f32.mrf.mxu1 }
 0x146   :  { %v516_v55 = vadd.f32 %v3737_v13, %v515_v46 }
 0x147   :  { %v637_v50 = vpack.c.bf16 %v583_v49, %v582_v48 }
 0x14a   :  { %v460_v53 = vpop.f32.mrf.mxu0 }
 0x14b   :  { %v461_v17 = vadd.f32 %v3737_v13, %v460_v53 }
 0x14d   :  { %2696 = vmatmul.msk.bf16.gmra.mxu0 %vm294_vm0, %v3424_v51  ;;  %v584_v24 = vmax.f32 %v461_v17, 0.0  ;;  %v547_v49 = vpop.f32.mrf.mxu3  ;;  %v517_v52 = vpop.f32.mrf.mxu1 }
 0x152   :  { %v462_v54 = vpop.f32.mrf.mxu0 }
 0x153   :  { %v463_v14 = vadd.f32 %v3737_v13, %v462_v54 }
 0x155   :  { %v585_v21 = vmax.f32 %v463_v14, 0.0  ;;  %v548_v14 = vadd.f32 %v3737_v13, %v547_v49 }
 0x157   :  { %v638_v29 = vpack.c.bf16 %v585_v21, %v584_v24  ;;  %v541_v21 = vadd.f32 %v3737_v13, %v540_v27 }
 0x159   :  { %v616_v27 = vmax.f32 %v541_v21, 0.0 }
 0x15a   :  { %v465_v57 = vpop.f32.mrf.mxu0 }
 0x15b   :  { %v466_v10 = vadd.f32 %v3737_v13, %v465_v57  ;;  %v3902_v54 = vpop.f32.mrf.mxu1 }
 0x15d   :  { %2697 = vmatmul.msk.bf16.gmra.mxu0 %vm294_vm0, %v3425_v56  ;;  %v586_v18 = vmax.f32 %v466_v10, 0.0  ;;  %v518_v56 = vadd.f32 %v3737_v13, %v517_v52  ;;  %v546_v10 = vadd.f32 %v3737_v13, %v545_v44 }
 0x15f   :  { %v607_v59 = vmax.f32 %v518_v56, 0.0  ;;  %v618_v24 = vmax.f32 %v546_v10, 0.0  ;;  %v521_v56 = vadd.f32 %v3737_v13, %v3902_v54  ;;  %v3456_v54 = vld [vmem:[%s4598_s5 + $0x8] sm:$0xff]  ;;  %v3455_v10 = vld [vmem:[%s4598_s5] sm:$0xff] }
 0x162   :  { %v467_v58 = vpop.f32.mrf.mxu0 }
 0x163   :  { %v468_v7 = vadd.f32 %v3737_v13, %v467_v58  ;;  %v606_v58 = vmax.f32 %v516_v55, 0.0 }
 0x165   :  { %v587_v15 = vmax.f32 %v468_v7, 0.0 }
 0x167   :  { %v639_v23 = vpack.c.bf16 %v587_v15, %v586_v18  ;;  %v3461_v18 = vld [vmem:[%s4598_s5 + $0x30] sm:$0xff] }
 0x16a   :  { %v470_v61 = vpop.f32.mrf.mxu0 }
 0x16b   :  { %v471_v4 = vadd.f32 %v3737_v13, %v470_v61  ;;  %v3908_v61 = vpop.f32.mrf.mxu1 }
 0x16d   :  { %2698 = vmatmul.msk.bf16.gmra.mxu0 %vm294_vm0, %v3426_v60  ;;  %v588_v11 = vmax.f32 %v471_v4, 0.0 }
 0x172   :  { %v472_v62 = vpop.f32.mrf.mxu0 }
 0x173   :  { %v473_v2 = vadd.f32 %v3737_v13, %v472_v62  ;;  %v649_v62 = vpack.c.bf16 %v607_v59, %v606_v58 }
 0x175   :  { %v589_v8 = vmax.f32 %v473_v2, 0.0  ;;  %698 = vmatpush.bf16.msrb.mxu3 %v649_v62 }
 0x177   :  { %v640_v16 = vpack.c.bf16 %v589_v8, %v588_v11 }
 0x17a   :  { %v475_v63 = vpop.f32.mrf.mxu0 }
 0x17b   :  { %v476_v0 = vadd.f32 %v3737_v13, %v475_v63 }
 0x17d   :  { %v590_v5 = vmax.f32 %v476_v0, 0.0 }
 0x182   :  { %v477_v1 = vpop.f32.mrf.mxu0 }
 0x183   :  { %v478_v3 = vadd.f32 %v3737_v13, %v477_v1  ;;  %v525_v1 = vpop.f32.mrf.mxu1 }
 0x185   :  { %v591_v6 = vmax.f32 %v478_v3, 0.0 }
 0x187   :  { %v641_v9 = vpack.c.bf16 %v591_v6, %v590_v5 }
 0x189   :  { %685 = vmatpush.bf16.msra.mxu2 %v641_v9  ;;  %v3462_v9 = vld [vmem:[%s4598_s5 + $0x38] sm:$0xff] }
 0x18a   :  { %v480_v12 = vpop.f32.mrf.mxu0 }
 0x18b   :  { %v481_v25 = vadd.f32 %v3737_v13, %v480_v12  ;;  %v527_v12 = vpop.f32.mrf.mxu1 }
 0x18c   :  { %v528_v46 = vadd.f32 %v3737_v13, %v527_v12 }
 0x18d   :  { %686 = vmatpush.bf16.msra.mxu2 %v640_v16  ;;  %v592_v30 = vmax.f32 %v481_v25, 0.0  ;;  %v619_v25 = vmax.f32 %v548_v14, 0.0 }
 0x18e   :  { %v611_v59 = vmax.f32 %v528_v46, 0.0  ;;  %v3446_v46 = vld [vmem:[%s4600_s4 + $0x34] sm:$0xf0] }
 0x191   :  { %687 = vmatpush.bf16.msra.mxu2 %v639_v23  ;;  %v543_v23 = vadd.f32 %v3737_v13, %v542_v41 }
 0x192   :  { %v482_v26 = vpop.f32.mrf.mxu0 }
 0x193   :  { %v483_v28 = vadd.f32 %v3737_v13, %v482_v26 }
 0x195   :  { %v593_v31 = vmax.f32 %v483_v28, 0.0  ;;  %688 = vmatpush.bf16.msra.mxu2 %v638_v29  ;;  %v3460_v28 = vld [vmem:[%s4598_s5 + $0x28] sm:$0xff]  ;;  %v536_v29 = vadd.f32 %v3737_v13, %v3879_v20 }
 0x197   :  { %v3885_v34 = vpack.c.bf16 %v593_v31, %v592_v30  ;;  %v530_v31 = vpop.f32.mrf.mxu1  ;;  %v614_v20 = vmax.f32 %v536_v29, 0.0 }
 0x199   :  { %689 = vmatpush.bf16.msra.mxu2 %v637_v50 }
 0x19a   :  { %v485_v35 = vpop.f32.mrf.mxu0 }
 0x19b   :  { %v486_v36 = vadd.f32 %v3737_v13, %v485_v35  ;;  %v538_v35 = vadd.f32 %v3737_v13, %v3883_v33 }
 0x19d   :  { %690 = vmatpush.bf16.msra.mxu2 %v3831_v40  ;;  %v594_v38 = vmax.f32 %v486_v36, 0.0  ;;  %v617_v36 = vmax.f32 %v543_v23, 0.0  ;;  %v615_v41 = vmax.f32 %v538_v35, 0.0 }
 0x19f   :  { %v654_v33 = vpack.c.bf16 %v617_v36, %v616_v27  ;;  %v653_v55 = vpack.c.bf16 %v615_v41, %v614_v20  ;;  %v3465_v20 = vld [vmem:[%s4598_s5 + $0x50] sm:$0xff]  ;;  %v3464_v41 = vld [vmem:[%s4598_s5 + $0x48] sm:$0xff] }
 0x1a1   :  { %691 = vmatpush.bf16.msra.mxu2 %v3815_v32 }
 0x1a2   :  { %v487_v19 = vpop.f32.mrf.mxu0 }
 0x1a3   :  { %v488_v37 = vadd.f32 %v3737_v13, %v487_v19  ;;  %v655_v19 = vpack.c.bf16 %v619_v25, %v618_v24 }
 0x1a5   :  { %v595_v39 = vmax.f32 %v488_v37, 0.0  ;;  %692 = vmatpush.bf16.msra.mxu2 %v3800_v22  ;;  %v550_v22 = vpop.f32.mrf.mxu3  ;;  %v3459_v37 = vld [vmem:[%s4598_s5 + $0x20] sm:$0xff] }
 0x1a6   :  { %v551_v4 = vadd.f32 %v3737_v13, %v550_v22 }
 0x1a7   :  { %v3892_v42 = vpack.c.bf16 %v595_v39, %v594_v38  ;;  %v624_v38 = vld [vmem:[%s4599_s3] sm:$0xff] }
 0x1a8   :  { %v620_v15 = vmax.f32 %v551_v4, 0.0  ;;  %v661_v39 = vunpack.c.h.b16 %v624_v38  ;;  %v660_v44 = vunpack.c.l.b16 %v624_v38 }
 0x1a9   :  { %937 = vmatpush.bf16.msrb.mxu2 %v3462_v9 }
 0x1aa   :  { %v490_v43 = vpop.f32.mrf.mxu0  ;;  %v664_v49 = vpack.c.b16 %v660_v44, %v660_v44  ;;  %v2712_v44 = vld [vmem:[%s4600_s4 + $0x8] sm:$0xf0] }
 0x1ab   :  { %v491_v45 = vadd.f32 %v3737_v13, %v490_v43  ;;  %v531_v43 = vadd.f32 %v3737_v13, %v530_v31 }
 0x1ac   :  { %680 = vmatmul.bf16.vlgmr.msrb.gmra.mxu1 %v664_v49 }
 0x1ad   :  { %v596_v48 = vmax.f32 %v491_v45, 0.0  ;;  %v552_v57 = vpop.f32.mrf.mxu3  ;;  %938 = vmatpush.bf16.msrb.mxu2 %v3461_v18  ;;  %v665_v45 = vpack.c.b16 %v661_v39, %v661_v39  ;;  %v612_v52 = vmax.f32 %v531_v43, 0.0  ;;  %v3440_v18 = vld [vmem:[%s4600_s4 + $0x4] sm:$0xf0]  ;;  %v3463_v43 = vld [vmem:[%s4598_s5 + $0x40] sm:$0xff] }
 0x1ae   :  { %v553_v5 = vadd.f32 %v3737_v13, %v552_v57  ;;  %v523_v57 = vadd.f32 %v3737_v13, %v3908_v61 }
 0x1af   :  { %693 = vmatmul.bf16.vlgmr.msra.gmra.mxu2 %v665_v45 }
 0x1b0   :  { %v621_v16 = vmax.f32 %v553_v5, 0.0  ;;  %v609_v4 = vmax.f32 %v523_v57, 0.0  ;;  %v2728_v57 = vld [vmem:[%s4600_s4 + $0x28] sm:$0xf0] }
 0x1b1   :  { %939 = vmatpush.bf16.msrb.mxu2 %v3460_v28 }
 0x1b2   :  { %v492_v40 = vpop.f32.mrf.mxu0  ;;  %v656_v26 = vpack.c.bf16 %v621_v16, %v620_v15 }
 0x1b3   :  { %v493_v47 = vadd.f32 %v3737_v13, %v492_v40  ;;  %v526_v40 = vadd.f32 %v3737_v13, %v525_v1 }
 0x1b5   :  { %v597_v32 = vmax.f32 %v493_v47, 0.0  ;;  %v555_v63 = vpop.f32.mrf.mxu3  ;;  %940 = vmatpush.bf16.msrb.mxu2 %v3459_v37  ;;  %v3458_v47 = vld [vmem:[%s4598_s5 + $0x18] sm:$0xff]  ;;  %v610_v58 = vmax.f32 %v526_v40, 0.0  ;;  %v2718_v37 = vld [vmem:[%s4600_s4 + $0x10] sm:$0xf] }
 0x1b6   :  { %v556_v2 = vadd.f32 %v3737_v13, %v555_v63  ;;  %v3457_v63 = vld [vmem:[%s4598_s5 + $0x10] sm:$0xff] }
 0x1b7   :  { %v3896_v50 = vpack.c.bf16 %v597_v32, %v596_v48  ;;  %v532_v32 = vpop.f32.mrf.mxu1  ;;  %v651_v5 = vpack.c.bf16 %v611_v59, %v610_v58  ;;  %v2734_v40 = vld [vmem:[%s4600_s4 + $0x30] sm:$0xf] }
 0x1b8   :  { %v622_v6 = vmax.f32 %v556_v2, 0.0  ;;  %v533_v22 = vadd.f32 %v3737_v13, %v532_v32  ;;  %v608_v2 = vmax.f32 %v521_v56, 0.0  ;;  %v2720_v32 = vld [vmem:[%s4600_s4 + $0x18] sm:$0xf0]  ;;  %v3443_v56 = vld [vmem:[%s4600_s4 + $0x24] sm:$0xf] }
 0x1b9   :  { %941 = vmatpush.bf16.msrb.mxu2 %v3458_v47  ;;  %v2735_v47 = vor.u32 %v3446_v46, %v2734_v40  ;;  %v2731_v58 = vor.u32 %v3443_v56, %v2728_v57  ;;  %v2750_v59 = vld [vmem:[%s4600_s4 + $0x50] sm:$0xf] }
 0x1ba   :  { %v3898_v51 = vpop.f32.mrf.mxu0  ;;  %v613_v62 = vmax.f32 %v533_v22, 0.0  ;;  %v650_v16 = vpack.c.bf16 %v609_v4, %v608_v2  ;;  %v3448_v22 = vld [vmem:[%s4600_s4 + $0x44] sm:$0xf0]  ;;  %v2736_v2 = vld [vmem:[%s4600_s4 + $0x38] sm:$0xf0]  ;;  %v3521_v56 = vld [vmem:[%s4602_s8 + $0x170] sm:$0xff] }
 0x1bb   :  { %v2758_v4 = vld [vmem:[%s4600_s4 + $0x60] sm:$0xf] }
 0x1bc   :  { %v652_v1 = vpack.c.bf16 %v613_v62, %v612_v52  ;;  %v2742_v52 = vld [vmem:[%s4600_s4 + $0x40] sm:$0xf]  ;;  %v3450_v62 = vld [vmem:[%s4600_s4 + $0x54] sm:$0xf0] }
 0x1bd   :  { %v557_v3 = vpop.f32.mrf.mxu3  ;;  %942 = vmatpush.bf16.msrb.mxu2 %v3457_v63  ;;  %v2751_v63 = vor.u32 %v3450_v62, %v2750_v59 }
 0x1be   :  { %v558_v7 = vadd.f32 %v3737_v13, %v557_v3 }
 0x1c0   :  { %v623_v8 = vmax.f32 %v558_v7, 0.0 }
 0x1c1   :  { %943 = vmatpush.bf16.msrb.mxu2 %v3456_v54 }
 0x1c2   :  { %v3900_v53 = vpop.f32.mrf.mxu0  ;;  %v657_v17 = vpack.c.bf16 %v623_v8, %v622_v6  ;;  %v625_v8 = vld [vmem:[%s4599_s3 + $0x8] sm:$0xff] }
 0x1c3   :  { %v663_v9 = vunpack.c.h.b16 %v625_v8  ;;  %v498_v29 = vadd.f32 %v3737_v13, %v3900_v53  ;;  %v3442_v53 = vld [vmem:[%s4600_s4 + $0x14] sm:$0xf0] }
 0x1c4   :  { %711 = vmatpush.bf16.msra.mxu1 %v657_v17  ;;  %v2710_v17 = vld [vmem:[%s4600_s4] sm:$0xf]  ;;  %v2719_v38 = vor.u32 %v3442_v53, %v2718_v37 }
 0x1c5   :  { %944 = vmatpush.bf16.msrb.mxu2 %v3455_v10  ;;  %v2711_v25 = vor.u32 %v3440_v18, %v2710_v17  ;;  %v599_v27 = vmax.f32 %v498_v29, 0.0  ;;  %v4103_v53 = vld [vmem:[%s4601_s6] ss:$0 sm:$0xff] }
 0x1c8   :  { %712 = vmatpush.bf16.msra.mxu1 %v656_v26  ;;  %945 = vmatmul.bf16.vlgmr.msrb.gmra.mxu2 %v2711_v25  ;;  %v3451_v25 = vld [vmem:[%s4600_s4 + $0x64] sm:$0xf] }
 0x1ca   :  { %v3906_v60 = vpop.f32.mrf.mxu0 }
 0x1cb   :  { %v501_v26 = vadd.f32 %v3737_v13, %v3906_v60 }
 0x1cc   :  { %713 = vmatpush.bf16.msra.mxu1 %v655_v19 }
 0x1cd   :  { %v600_v35 = vmax.f32 %v501_v26, 0.0 }
 0x1d0   :  { %714 = vmatpush.bf16.msra.mxu1 %v654_v33  ;;  %v3439_v33 = vld [vmem:[%s4600_s4 + $0x4] sm:$0xf] }
 0x1d1   :  { %v2715_v45 = vor.u32 %v3439_v33, %v2712_v44 }
 0x1d2   :  { %v3910_v0 = vpop.f32.mrf.mxu0 }
 0x1d3   :  { %v503_v21 = vadd.f32 %v3737_v13, %v3910_v0  ;;  %v496_v0 = vadd.f32 %v3737_v13, %v3898_v51  ;;  %v3466_v51 = vld [vmem:[%s4598_s5 + $0x58] sm:$0xff] }
 0x1d4   :  { %715 = vmatpush.bf16.msra.mxu1 %v653_v55  ;;  %v2743_v55 = vor.u32 %v3448_v22, %v2742_v52  ;;  %v3522_v52 = vld [vmem:[%s4602_s8 + $0x178] sm:$0xff]  ;;  %v3481_v22 = vld [vmem:[%s4602_s8 + $0x30] sm:$0xff] }
 0x1d5   :  { %v598_v19 = vmax.f32 %v496_v0, 0.0  ;;  %2228 = vmatpush.bf16.msra.mxu2 %v3522_v52  ;;  %v3525_v52 = vld [vmem:[%s4602_s8 + $0x190] sm:$0xff] }
 0x1d7   :  { %v645_v60 = vpack.c.bf16 %v599_v27, %v598_v19 }
 0x1d8   :  { %716 = vmatpush.bf16.msra.mxu1 %v652_v1  ;;  %950 = vmatmul.bf16.gmra.mxu2 %v2719_v38  ;;  %v3445_v1 = vld [vmem:[%s4600_s4 + $0x34] sm:$0xf] }
 0x1d9   :  { %2229 = vmatpush.bf16.msra.mxu2 %v3521_v56  ;;  %v3524_v56 = vld [vmem:[%s4602_s8 + $0x188] sm:$0xff] }
 0x1da   :  { %v3920_v11 = vpop.f32.mrf.mxu0 }
 0x1db   :  { %v506_v12 = vadd.f32 %v3737_v13, %v3920_v11  ;;  %v667_v11 = vpack.c.b16 %v663_v9, %v663_v9  ;;  %v3454_v9 = vld [vmem:[%s4600_s4 + $0x74] sm:$0xf0] }
 0x1dc   :  { %717 = vmatpush.bf16.msra.mxu1 %v651_v5  ;;  %v3452_v5 = vld [vmem:[%s4600_s4 + $0x64] sm:$0xf0] }
 0x1dd   :  { %v602_v28 = vmax.f32 %v506_v12, 0.0  ;;  %v2759_v54 = vor.u32 %v3452_v5, %v2758_v4  ;;  %v3503_v4 = vld [vmem:[%s4602_s8 + $0xe0] sm:$0xff] }
 0x1de   :  { %v3519_v5 = vld [vmem:[%s4602_s8 + $0x160] sm:$0xff] }
 0x1e0   :  { %718 = vmatpush.bf16.msra.mxu1 %v650_v16 }
 0x1e2   :  { %v507_v30 = vpop.f32.mrf.mxu0 }
 0x1e3   :  { %v508_v6 = vadd.f32 %v3737_v13, %v507_v30  ;;  %v601_v30 = vmax.f32 %v503_v21, 0.0  ;;  %719 = vmatmul.bf16.vlgmr.msra.gmra.mxu1 %v667_v11  ;;  %v2760_v11 = vld [vmem:[%s4600_s4 + $0x68] sm:$0xf0] }
 0x1e4   :  { %v2763_v26 = vor.u32 %v3451_v25, %v2760_v11  ;;  %v3475_v11 = vld [vmem:[%s4602_s8] sm:$0xff] }
 0x1e5   :  { %v603_v23 = vmax.f32 %v508_v6, 0.0  ;;  %v646_v36 = vpack.c.bf16 %v601_v30, %v600_v35  ;;  %v2744_v6 = vld [vmem:[%s4600_s4 + $0x48] sm:$0xf0]  ;;  %v3453_v30 = vld [vmem:[%s4600_s4 + $0x74] sm:$0xf] }
 0x1e7   :  { %v647_v31 = vpack.c.bf16 %v603_v23, %v602_v28 }
 0x1ea   :  { %v510_v48 = vpop.f32.mrf.mxu0 }
 0x1eb   :  { %v511_v3 = vadd.f32 %v3737_v13, %v510_v48  ;;  %v3441_v48 = vld [vmem:[%s4600_s4 + $0x14] sm:$0xf] }
 0x1ec   :  { %v2723_v49 = vor.u32 %v3441_v48, %v2720_v32  ;;  %v3482_v32 = vld [vmem:[%s4602_s8 + $0x38] sm:$0xff] }
 0x1ed   :  { %v604_v14 = vmax.f32 %v511_v3, 0.0  ;;  %v2739_v3 = vor.u32 %v3445_v1, %v2736_v2  ;;  %2163 = vmatpush.bf16.msrb.mxu1 %v3482_v32  ;;  %v3504_v1 = vld [vmem:[%s4602_s8 + $0xe8] sm:$0xff] }
 0x1ee   :  { %v3520_v2 = vld [vmem:[%s4602_s8 + $0x168] sm:$0xff] }
 0x1ef   :  { %2230 = vmatpush.bf16.msra.mxu2 %v3520_v2  ;;  %v3539_v2 = vld [vmem:[%s4602_s8 + $0x200] sm:$0xff] }
 0x1f1   :  { %2164 = vmatpush.bf16.msrb.mxu1 %v3481_v22  ;;  %v3541_v22 = vld [vmem:[%s4602_s8 + $0x210] sm:$0xff] }
 0x1f2   :  { %v512_v61 = vpop.f32.mrf.mxu0 }
 0x1f3   :  { %v513_v7 = vadd.f32 %v3737_v13, %v512_v61  ;;  %v662_v13 = vunpack.c.l.b16 %v625_v8  ;;  %v3447_v61 = vld [vmem:[%s4600_s4 + $0x44] sm:$0xf]  ;;  %v2766_v8 = vld [vmem:[%s4600_s4 + $0x70] sm:$0xf]  ;;  %2231 = vmatpush.bf16.msra.mxu2 %v3519_v5 }
 0x1f4   :  { %v2767_v10 = vor.u32 %v3454_v9, %v2766_v8  ;;  %v3478_v8 = vld [vmem:[%s4602_s8 + $0x18] sm:$0xff] }
 0x1f5   :  { %v605_v15 = vmax.f32 %v513_v7, 0.0  ;;  %v666_v39 = vpack.c.b16 %v662_v13, %v662_v13  ;;  %v2747_v7 = vor.u32 %v3447_v61, %v2744_v6  ;;  %v3502_v9 = vld [vmem:[%s4602_s8 + $0xd8] sm:$0xff] }
 0x1f7   :  { %v648_v24 = vpack.c.bf16 %v605_v15, %v604_v14  ;;  %v3449_v14 = vld [vmem:[%s4600_s4 + $0x54] sm:$0xf]  ;;  %v2752_v15 = vld [vmem:[%s4600_s4 + $0x58] sm:$0xf0] }
 0x1f8   :  { %v2755_v18 = vor.u32 %v3449_v14, %v2752_v15  ;;  %v3501_v14 = vld [vmem:[%s4602_s8 + $0xd0] sm:$0xff] }
 0x1f9   :  { %699 = vmatpush.bf16.msrb.mxu3 %v648_v24  ;;  %v3517_v15 = vld [vmem:[%s4602_s8 + $0x150] sm:$0xff] }
 0x1fd   :  { %700 = vmatpush.bf16.msrb.mxu3 %v647_v31  ;;  %v2768_v31 = vld [vmem:[%s4600_s4 + $0x78] sm:$0xf0] }
 0x1fe   :  { %v2771_v0 = vor.u32 %v3453_v30, %v2768_v31  ;;  %v3490_v30 = vld [vmem:[%s4602_s8 + $0x78] sm:$0xff] }
 0x1ff   :  { %v3530_v31 = vld [vmem:[%s4602_s8 + $0x1b8] sm:$0xff] }
 0x201   :  { %701 = vmatpush.bf16.msrb.mxu3 %v646_v36 }
 0x205   :  { %702 = vmatpush.bf16.msrb.mxu3 %v645_v60 }
 0x209   :  { %703 = vmatpush.bf16.msrb.mxu3 %v3896_v50  ;;  %v2726_v50 = vld [vmem:[%s4600_s4 + $0x20] sm:$0xf] }
 0x20d   :  { %704 = vmatpush.bf16.msrb.mxu3 %v3892_v42  ;;  %v3444_v42 = vld [vmem:[%s4600_s4 + $0x24] sm:$0xf0] }
 0x211   :  { %705 = vmatpush.bf16.msrb.mxu3 %v3885_v34  ;;  %v2727_v34 = vor.u32 %v3444_v42, %v2726_v50 }
 0x213   :  { %955 = vmatmul.bf16.gmra.mxu2 %v2727_v34 }
 0x214   :  { %706 = vmatmul.bf16.vlgmr.msrb.gmra.mxu3 %v666_v39 }
 0x215   :  { %990 = vmatpush.bf16.msra.mxu3 %v3466_v51 }
 0x219   :  { %991 = vmatpush.bf16.msra.mxu3 %v3465_v20 }
 0x21d   :  { %992 = vmatpush.bf16.msra.mxu3 %v3464_v41 }
 0x221   :  { %993 = vmatpush.bf16.msra.mxu3 %v3463_v43 }
 0x223   :  { %960 = vmatmul.bf16.gmra.mxu2 %v2735_v47 }
 0x224   :  { %2820 = vmatmul.msk.bf16.vlgmr.msra.gmra.mxu3 %vm912_vm1, %v2715_v45 }
 0x229   :  { %v681_v12 = vpop.f32.mrf.mxu1 }
 0x231   :  { %v683_v21 = vpop.f32.mrf.mxu1 }
 0x232   :  { %v694_v16 = vpop.f32.mrf.mxu2  ;;  %v3476_v21 = vld [vmem:[%s4602_s8 + $0x8] sm:$0xff] }
 0x233   :  { %965 = vmatmul.bf16.gmra.mxu2 %v2743_v55  ;;  %v695_v17 = vadd.f32 %v694_v16, %v681_v12  ;;  %v3505_v55 = vld [vmem:[%s4602_s8 + $0xf0] sm:$0xff] }
 0x234   :  { %2821 = vmatmul.msk.bf16.gmra.mxu3 %vm912_vm1, %v2723_v49  ;;  %v3506_v49 = vld [vmem:[%s4602_s8 + $0xf8] sm:$0xff]  ;;  %v3477_v12 = vld [vmem:[%s4602_s8 + $0x10] sm:$0xff] }
 0x235   :  { %2202 = vmatpush.bf16.msrb.mxu3 %v3506_v49  ;;  %v3485_v49 = vld [vmem:[%s4602_s8 + $0x50] sm:$0xff] }
 0x239   :  { %2203 = vmatpush.bf16.msrb.mxu3 %v3505_v55  ;;  %v3484_v55 = vld [vmem:[%s4602_s8 + $0x48] sm:$0xff] }
 0x23a   :  { %v696_v23 = vpop.f32.mrf.mxu2 }
 0x23b   :  { %v3500_v23 = vld [vmem:[%s4602_s8 + $0xc8] sm:$0xff] }
 0x23d   :  { %2204 = vmatpush.bf16.msrb.mxu3 %v3504_v1  ;;  %v3523_v1 = vld [vmem:[%s4602_s8 + $0x180] sm:$0xff] }
 0x241   :  { %2205 = vmatpush.bf16.msrb.mxu3 %v3503_v4 }
 0x243   :  { %970 = vmatmul.bf16.gmra.mxu2 %v2751_v63  ;;  %v3480_v63 = vld [vmem:[%s4602_s8 + $0x28] sm:$0xff] }
 0x244   :  { %2822 = vmatmul.msk.bf16.gmra.mxu3 %vm912_vm1, %v2731_v58  ;;  %2165 = vmatpush.bf16.msrb.mxu1 %v3480_v63  ;;  %v3483_v63 = vld [vmem:[%s4602_s8 + $0x40] sm:$0xff] }
 0x245   :  { %2206 = vmatpush.bf16.msrb.mxu3 %v3502_v9 }
 0x249   :  { %2207 = vmatpush.bf16.msrb.mxu3 %v3501_v14 }
 0x24b   :  { %v946_v29 = vpop.f32.mrf.mxu2 }
 0x24c   :  { %v947_v38 = vadd.f32 %v4103_v53, %v946_v29 }
 0x24d   :  { %2208 = vmatpush.bf16.msrb.mxu3 %v3500_v23 }
 0x253   :  { %975 = vmatmul.bf16.gmra.mxu2 %v2759_v54  ;;  %v4095_v35 = vpop.f32.mrf.mxu2 }
 0x254   :  { %2823 = vmatmul.msk.bf16.gmra.mxu3 %vm912_vm1, %v2739_v3  ;;  %v3479_v3 = vld [vmem:[%s4602_s8 + $0x20] sm:$0xff] }
 0x255   :  { %2166 = vmatpush.bf16.msrb.mxu1 %v3479_v3 }
 0x259   :  { %2167 = vmatpush.bf16.msrb.mxu1 %v3478_v8 }
 0x25b   :  { %v951_v60 = vpop.f32.mrf.mxu2 }
 0x25c   :  { %v952_v42 = vadd.f32 %v4103_v53, %v951_v60  ;;  %v3489_v60 = vld [vmem:[%s4602_s8 + $0x70] sm:$0xff] }
 0x25d   :  { %2168 = vmatpush.bf16.msrb.mxu1 %v3477_v12  ;;  %v3498_v12 = vld [vmem:[%s4602_s8 + $0xb8] sm:$0xff] }
 0x260   :  { %v720_v24 = vpop.f32.mrf.mxu1 }
 0x261   :  { %2169 = vmatpush.bf16.msrb.mxu1 %v3476_v21 }
 0x263   :  { %980 = vmatmul.bf16.gmra.mxu2 %v2767_v10  ;;  %v953_v13 = vpop.f32.mrf.mxu2  ;;  %v3518_v10 = vld [vmem:[%s4602_s8 + $0x158] sm:$0xff] }
 0x264   :  { %2824 = vmatmul.msk.bf16.gmra.mxu3 %vm912_vm1, %v2747_v7  ;;  %v954_v33 = vadd.f32 %v4103_v53, %v953_v13  ;;  %2232 = vmatpush.bf16.msra.mxu2 %v3518_v10  ;;  %v949_v10 = vadd.f32 %v4103_v53, %v4095_v35 }
 0x265   :  { %2170 = vmatpush.bf16.msrb.mxu1 %v3475_v11 }
 0x268   :  { %v722_v28 = vpop.f32.mrf.mxu1  ;;  %2233 = vmatpush.bf16.msra.mxu2 %v3517_v15 }
 0x269   :  { %v3515_v28 = vld [vmem:[%s4602_s8 + $0x140] sm:$0xff]  ;;  %2176 = vmatpush.bf16.msra.mxu1 %v3490_v30  ;;  %v3570_v30 = vld [vmem:[%s4602_s8 + $0x2f8] sm:$0xff] }
 0x26d   :  { %2177 = vmatpush.bf16.msra.mxu1 %v3489_v60 }
 0x274   :  { %2825 = vmatmul.msk.bf16.gmra.mxu3 %vm912_vm1, %v2755_v18 }
 0x284   :  { %2826 = vmatmul.msk.bf16.gmra.mxu3 %vm912_vm1, %v2763_v26  ;;  %v3499_v26 = vld [vmem:[%s4602_s8 + $0xc0] sm:$0xff] }
 0x285   :  { %2209 = vmatpush.bf16.msrb.mxu3 %v3499_v26 }
 0x289   :  { %2241 = vmatpush.bf16.msra.mxu3 %v3530_v31 }
 0x294   :  { %2827 = vmatmul.msk.bf16.gmra.mxu3 %vm912_vm1, %v2771_v0  ;;  %v3546_v0 = vld [vmem:[%s4602_s8 + $0x238] sm:$0xff] }
 0x296   :  { %v956_v50 = vpop.f32.mrf.mxu2 }
 0x297   :  { %v707_v27 = vpop.f32.mrf.mxu3  ;;  %v957_v46 = vadd.f32 %v4103_v53, %v956_v50  ;;  %v3544_v50 = vld [vmem:[%s4602_s8 + $0x228] sm:$0xff] }
 0x298   :  { %v708_v36 = vadd.f32 %v707_v27, %v695_v17 }
 0x29a   :  { %v4098_v19 = vadd.f32 %v720_v24, %v708_v36  ;;  %v3516_v24 = vld [vmem:[%s4602_s8 + $0x148] sm:$0xff] }
 0x29b   :  { %2234 = vmatpush.bf16.msra.mxu2 %v3516_v24 }
 0x29e   :  { %v958_v43 = vpop.f32.mrf.mxu2 }
 0x29f   :  { %v709_v37 = vpop.f32.mrf.mxu3  ;;  %v959_v58 = vadd.f32 %v4103_v53, %v958_v43  ;;  %2235 = vmatpush.bf16.msra.mxu2 %v3515_v28  ;;  %v3543_v43 = vld [vmem:[%s4602_s8 + $0x220] sm:$0xff] }
 0x2a0   :  { %v3529_v37 = vld [vmem:[%s4602_s8 + $0x1b0] sm:$0xff] }
 0x2a1   :  { %2242 = vmatpush.bf16.msra.mxu3 %v3529_v37 }
 0x2a3   :  { %2267 = vmatpush.bf16.msrb.mxu2 %v3546_v0 }
 0x2a6   :  { %v961_v40 = vpop.f32.mrf.mxu2 }
 0x2a7   :  { %v995_v51 = vpop.f32.mrf.mxu3  ;;  %v962_v54 = vadd.f32 %v4103_v53, %v961_v40  ;;  %v3486_v40 = vld [vmem:[%s4602_s8 + $0x58] sm:$0xff] }
 0x2a8   :  { %v996_v39 = vadd.f32 %v995_v51, %v947_v38  ;;  %v3545_v38 = vld [vmem:[%s4602_s8 + $0x230] sm:$0xff]  ;;  %v3488_v51 = vld [vmem:[%s4602_s8 + $0x68] sm:$0xff] }
 0x2a9   :  { %2268 = vmatpush.bf16.msrb.mxu2 %v3545_v38  ;;  %2178 = vmatpush.bf16.msra.mxu1 %v3488_v51 }
 0x2aa   :  { %1051 = vst [vmem:[#allocation1] ss:$9 sm:$0xff] %v996_v39  ;;  %v3528_v39 = vld [vmem:[%s4602_s8 + $0x1a8] sm:$0xff] }
 0x2ab   :  { %2243 = vmatpush.bf16.msra.mxu3 %v3528_v39 }
 0x2ad   :  { %2269 = vmatpush.bf16.msrb.mxu2 %v3544_v50  ;;  %v3552_v50 = vld [vmem:[%s4602_s8 + $0x268] sm:$0xff] }
 0x2ae   :  { %v963_v57 = vpop.f32.mrf.mxu2 }
 0x2af   :  { %v4106_v20 = vpop.f32.mrf.mxu3  ;;  %v964_v16 = vadd.f32 %v4103_v53, %v963_v57  ;;  %v3540_v57 = vld [vmem:[%s4602_s8 + $0x208] sm:$0xff] }
 0x2b0   :  { %v998_v21 = vadd.f32 %v4106_v20, %v949_v10  ;;  %v3576_v10 = vld [vmem:[%s4602_s8 + $0x328] sm:$0xff] }
 0x2b1   :  { %2270 = vmatpush.bf16.msrb.mxu2 %v3543_v43  ;;  %v3494_v43 = vld [vmem:[%s4602_s8 + $0x98] sm:$0xff] }
 0x2b6   :  { %v966_v6 = vpop.f32.mrf.mxu2 }
 0x2b7   :  { %v1000_v41 = vpop.f32.mrf.mxu3  ;;  %v967_v29 = vadd.f32 %v4103_v53, %v966_v6 }
 0x2b8   :  { %v1001_v34 = vadd.f32 %v1000_v41, %v952_v42  ;;  %v3487_v41 = vld [vmem:[%s4602_s8 + $0x60] sm:$0xff] }
 0x2b9   :  { %2179 = vmatpush.bf16.msra.mxu1 %v3487_v41  ;;  %v3551_v41 = vld [vmem:[%s4602_s8 + $0x260] sm:$0xff] }
 0x2ba   :  { %1053 = vst [vmem:[#allocation1 + $0x1] ss:$9 sm:$0xff] %v1001_v34  ;;  %v3527_v34 = vld [vmem:[%s4602_s8 + $0x1a0] sm:$0xff] }
 0x2bb   :  { %2244 = vmatpush.bf16.msra.mxu3 %v3527_v34  ;;  %v3567_v34 = vld [vmem:[%s4602_s8 + $0x2e0] sm:$0xff] }
 0x2bd   :  { %2180 = vmatpush.bf16.msra.mxu1 %v3486_v40 }
 0x2be   :  { %v4183_v25 = vpop.f32.mrf.mxu2 }
 0x2bf   :  { %v1002_v44 = vpop.f32.mrf.mxu3 }
 0x2c0   :  { %v4110_v45 = vadd.f32 %v1002_v44, %v954_v33 }
 0x2c1   :  { %2181 = vmatpush.bf16.msra.mxu1 %v3485_v49  ;;  %v3549_v49 = vld [vmem:[%s4602_s8 + $0x250] sm:$0xff] }
 0x2c5   :  { %2182 = vmatpush.bf16.msra.mxu1 %v3484_v55  ;;  %v3548_v55 = vld [vmem:[%s4602_s8 + $0x248] sm:$0xff] }
 0x2c6   :  { %v971_v13 = vpop.f32.mrf.mxu2 }
 0x2c7   :  { %v1005_v47 = vpop.f32.mrf.mxu3  ;;  %v972_v33 = vadd.f32 %v4103_v53, %v971_v13 }
 0x2c8   :  { %v1006_v48 = vadd.f32 %v1005_v47, %v957_v46  ;;  %v3526_v46 = vld [vmem:[%s4602_s8 + $0x198] sm:$0xff] }
 0x2c9   :  { %v3542_v47 = vld [vmem:[%s4602_s8 + $0x218] sm:$0xff]  ;;  %2245 = vmatpush.bf16.msra.mxu3 %v3526_v46  ;;  %2183 = vmatpush.bf16.msra.mxu1 %v3483_v63 }
 0x2ca   :  { %1055 = vst [vmem:[#allocation1 + $0x2] ss:$9 sm:$0xff] %v1006_v48  ;;  %2271 = vmatpush.bf16.msrb.mxu2 %v3542_v47  ;;  %v3550_v46 = vld [vmem:[%s4602_s8 + $0x258] sm:$0xff] }
 0x2cb   :  { %v3566_v47 = vld [vmem:[%s4602_s8 + $0x2d8] sm:$0xff] }
 0x2cc   :  { %v3514_v63 = vld [vmem:[%s4602_s8 + $0x138] sm:$0xff] }
 0x2cd   :  { %2246 = vmatpush.bf16.msra.mxu3 %v3525_v52  ;;  %v3565_v52 = vld [vmem:[%s4602_s8 + $0x2d0] sm:$0xff] }
 0x2ce   :  { %v973_v44 = vpop.f32.mrf.mxu2  ;;  %2272 = vmatpush.bf16.msrb.mxu2 %v3541_v22  ;;  %v3492_v22 = vld [vmem:[%s4602_s8 + $0x88] sm:$0xff] }
 0x2cf   :  { %v1007_v59 = vpop.f32.mrf.mxu3  ;;  %v974_v20 = vadd.f32 %v4103_v53, %v973_v44 }
 0x2d0   :  { %v4132_v62 = vadd.f32 %v1007_v59, %v959_v58 }
 0x2d1   :  { %2247 = vmatpush.bf16.msra.mxu3 %v3524_v56  ;;  %v3564_v56 = vld [vmem:[%s4602_s8 + $0x2c8] sm:$0xff] }
 0x2d2   :  { %2273 = vmatpush.bf16.msrb.mxu2 %v3540_v57  ;;  %v3491_v57 = vld [vmem:[%s4602_s8 + $0x80] sm:$0xff] }
 0x2d5   :  { %2248 = vmatpush.bf16.msra.mxu3 %v3523_v1  ;;  %v3578_v1 = vld [vmem:[%s4602_s8 + $0x338] sm:$0xff] }
 0x2d6   :  { %v976_v58 = vpop.f32.mrf.mxu2  ;;  %2274 = vmatpush.bf16.msrb.mxu2 %v3539_v2  ;;  %v3594_v2 = vld [vmem:[%s4602_s8 + $0x3b8] sm:$0xff] }
 0x2d7   :  { %v1010_v61 = vpop.f32.mrf.mxu3  ;;  %v977_v3 = vadd.f32 %v4103_v53, %v976_v58  ;;  %v3547_v58 = vld [vmem:[%s4602_s8 + $0x240] sm:$0xff] }
 0x2d8   :  { %v1011_v7 = vadd.f32 %v1010_v61, %v962_v54 }
 0x2da   :  { %1057 = vst [vmem:[#allocation1 + $0x3] ss:$9 sm:$0xff] %v1011_v7 }
 0x2de   :  { %v978_v54 = vpop.f32.mrf.mxu2 }
 0x2df   :  { %v1012_v17 = vpop.f32.mrf.mxu3  ;;  %v979_v38 = vadd.f32 %v4103_v53, %v978_v54 }
 0x2e0   :  { %v4172_v18 = vadd.f32 %v1012_v17, %v964_v16  ;;  %v3554_v17 = vld [vmem:[%s4602_s8 + $0x278] sm:$0xff] }
 0x2e6   :  { %v981_v6 = vpop.f32.mrf.mxu2 }
 0x2e7   :  { %v1015_v27 = vpop.f32.mrf.mxu3  ;;  %v982_v7 = vadd.f32 %v4103_v53, %v981_v6  ;;  %v3513_v6 = vld [vmem:[%s4602_s8 + $0x130] sm:$0xff] }
 0x2e8   :  { %v1016_v36 = vadd.f32 %v1015_v27, %v967_v29  ;;  %v969_v27 = vadd.f32 %v4103_v53, %v4183_v25  ;;  %v3497_v25 = vld [vmem:[%s4602_s8 + $0xb0] sm:$0xff] }
 0x2ea   :  { %1059 = vst [vmem:[#allocation1 + $0x4] ss:$9 sm:$0xff] %v1016_v36 }
 0x2ee   :  { %v983_v23 = vpop.f32.mrf.mxu2 }
 0x2ef   :  { %v4222_v42 = vpop.f32.mrf.mxu3  ;;  %v984_v60 = vadd.f32 %v4103_v53, %v983_v23  ;;  %v3569_v53 = vld [vmem:[%s4602_s8 + $0x2f0] sm:$0xff]  ;;  %v3510_v23 = vld [vmem:[%s4602_s8 + $0x118] sm:$0xff] }
 0x2f0   :  { %v1018_v37 = vadd.f32 %v4222_v42, %v969_v27  ;;  %v3568_v42 = vld [vmem:[%s4602_s8 + $0x2e8] sm:$0xff]  ;;  %v3571_v27 = vld [vmem:[%s4602_s8 + $0x300] sm:$0xff] }
 0x2f7   :  { %v1020_v48 = vpop.f32.mrf.mxu3 }
 0x2f8   :  { %v1021_v32 = vadd.f32 %v1020_v48, %v972_v33 }
 0x2fa   :  { %1061 = vst [vmem:[#allocation1 + $0x5] ss:$9 sm:$0xff] %v1021_v32  ;;  %v3493_v32 = vld [vmem:[%s4602_s8 + $0x90] sm:$0xff] }
 0x2ff   :  { %v1022_v59 = vpop.f32.mrf.mxu3 }
 0x300   :  { %v1023_v13 = vadd.f32 %v1022_v59, %v974_v20  ;;  %v3563_v59 = vld [vmem:[%s4602_s8 + $0x2c0] sm:$0xff]  ;;  %v3538_v20 = vld [vmem:[%s4602_s8 + $0x1f8] sm:$0xff] }
 0x307   :  { %v1025_v4 = vpop.f32.mrf.mxu3 }
 0x308   :  { %v1026_v5 = vadd.f32 %v1025_v4, %v977_v3 }
 0x30a   :  { %1063 = vst [vmem:[#allocation1 + $0x6] ss:$9 sm:$0xff] %v1026_v5 }
 0x30f   :  { %v1027_v61 = vpop.f32.mrf.mxu3 }
 0x310   :  { %v1028_v39 = vadd.f32 %v1027_v61, %v979_v38 }
 0x317   :  { %v1030_v8 = vpop.f32.mrf.mxu3 }
 0x318   :  { %v1031_v9 = vadd.f32 %v1030_v8, %v982_v7  ;;  %v3577_v7 = vld [vmem:[%s4602_s8 + $0x330] sm:$0xff] }
 0x319   :  { %v3593_v8 = vld [vmem:[%s4602_s8 + $0x3b0] sm:$0xff] }
 0x31a   :  { %1065 = vst [vmem:[#allocation1 + $0x7] ss:$9 sm:$0xff] %v1031_v9  ;;  %v3512_v9 = vld [vmem:[%s4602_s8 + $0x128] sm:$0xff] }
 0x31f   :  { %v1032_v36 = vpop.f32.mrf.mxu3 }
 0x320   :  { %v1033_v51 = vadd.f32 %v1032_v36, %v984_v60  ;;  %v3587_v36 = vld [vmem:[%s4602_s8 + $0x380] sm:$0xff]  ;;  %v3602_v60 = vld [vmem:[%s4602_s8 + $0x3f8] sm:$0xff] }
 0x321   :  { %v4277_v14 = vld [vmem:[#allocation1 + $0x12] sm:$0xff]  ;;  %v4279_v15 = vld [vmem:[#allocation1 + $0x24] sm:$0xff]  ;;  %v1069_v11 = vld [vmem:[#allocation1 + $0x1b] sm:$0xff] }
 0x322   :  { %v4281_v16 = vld [vmem:[#allocation1 + $0x3f] sm:$0xff]  ;;  %v1071_v35 = vld [vmem:[#allocation1 + $0x2d] sm:$0xff]  ;;  %v1109_v28 = vpack.c.bf16 %v1069_v11, %v1069_v11  ;;  %v1072_v0 = vld [vmem:[#allocation1 + $0x36] sm:$0xff]  ;;  %v1108_v5 = vpack.c.bf16 %v4277_v14, %v4277_v14 }
 0x323   :  { %v1066_v24 = vld [vmem:[#allocation1] sm:$0xff]  ;;  %v1111_v29 = vpack.c.bf16 %v1071_v35, %v1071_v35  ;;  %v1067_v31 = vld [vmem:[#allocation1 + $0x9] sm:$0xff]  ;;  %v1112_v40 = vpack.c.bf16 %v1072_v0, %v1072_v0  ;;  %v3590_v11 = vld [vmem:[%s4602_s8 + $0x398] sm:$0xff] }
 0x324   :  { %v1106_v26 = vpack.c.bf16 %v1066_v24, %v1066_v24  ;;  %1074 = vst [vmem:[#allocation1] ss:$9 sm:$0xff] %v998_v21  ;;  %2210 = vmatmul.bf16.vlgmr.msrb.gmra.mxu3 %v1109_v28  ;;  %v1107_v44 = vpack.c.bf16 %v1067_v31, %v1067_v31  ;;  %v3511_v14 = vld [vmem:[%s4602_s8 + $0x120] sm:$0xff]  ;;  %v3574_v24 = vld [vmem:[%s4602_s8 + $0x318] sm:$0xff]  ;;  %v3509_v35 = vld [vmem:[%s4602_s8 + $0x110] sm:$0xff] }
 0x325   :  { %1075 = vst [vmem:[#allocation1 + $0x1] ss:$9 sm:$0xff] %v4110_v45  ;;  %2236 = vmatmul.bf16.vlgmr.msra.gmra.mxu2 %v1111_v29  ;;  %2280 = vmatpush.bf16.msrb.mxu3 %v3554_v17  ;;  %v3553_v45 = vld [vmem:[%s4602_s8 + $0x270] sm:$0xff]  ;;  %v3575_v17 = vld [vmem:[%s4602_s8 + $0x320] sm:$0xff]  ;;  %v3508_v29 = vld [vmem:[%s4602_s8 + $0x108] sm:$0xff] }
 0x326   :  { %2171 = vmatmul.bf16.vlgmr.msrb.gmra.mxu1 %v1106_v26  ;;  %1076 = vst [vmem:[#allocation1 + $0x2] ss:$9 sm:$0xff] %v4132_v62  ;;  %2306 = vmatpush.bf16.msra.mxu2 %v3570_v30  ;;  %v3496_v62 = vld [vmem:[%s4602_s8 + $0xa8] sm:$0xff]  ;;  %v3591_v21 = vld [vmem:[%s4602_s8 + $0x3a0] sm:$0xff]  ;;  %v3573_v26 = vld [vmem:[%s4602_s8 + $0x310] sm:$0xff] }
 0x327   :  { %2189 = vmatpush.bf16.msrb.mxu1 %v3498_v12  ;;  %1077 = vst [vmem:[#allocation1 + $0x3] ss:$9 sm:$0xff] %v4172_v18  ;;  %v3495_v18 = vld [vmem:[%s4602_s8 + $0xa0] sm:$0xff]  ;;  %v3592_v12 = vld [vmem:[%s4602_s8 + $0x3a8] sm:$0xff]  ;;  %v3589_v28 = vld [vmem:[%s4602_s8 + $0x390] sm:$0xff] }
 0x328   :  { %1078 = vst [vmem:[#allocation1 + $0x4] ss:$9 sm:$0xff] %v1018_v37  ;;  %v3572_v30 = vld [vmem:[%s4602_s8 + $0x308] sm:$0xff]  ;;  %v3507_v0 = vld [vmem:[%s4602_s8 + $0x100] sm:$0xff] }
 0x329   :  { %1079 = vst [vmem:[#allocation1 + $0x5] ss:$9 sm:$0xff] %v1023_v13  ;;  %2281 = vmatpush.bf16.msrb.mxu3 %v3553_v45  ;;  %v3588_v31 = vld [vmem:[%s4602_s8 + $0x388] sm:$0xff] }
 0x32a   :  { %1080 = vst [vmem:[#allocation1 + $0x6] ss:$9 sm:$0xff] %v1028_v39  ;;  %2307 = vmatpush.bf16.msra.mxu2 %v3569_v53  ;;  %v3601_v53 = vld [vmem:[%s4602_s8 + $0x3f0] sm:$0xff]  ;;  %v3536_v39 = vld [vmem:[%s4602_s8 + $0x1e8] sm:$0xff] }
 0x32b   :  { %2190 = vmatpush.bf16.msrb.mxu1 %v3497_v25  ;;  %1081 = vst [vmem:[#allocation1 + $0x7] ss:$9 sm:$0xff] %v1033_v51  ;;  %v1110_v25 = vpack.c.bf16 %v4279_v15, %v4279_v15  ;;  %v3537_v51 = vld [vmem:[%s4602_s8 + $0x1f0] sm:$0xff]  ;;  %v3600_v15 = vld [vmem:[%s4602_s8 + $0x3e8] sm:$0xff] }
 0x32d   :  { %2282 = vmatpush.bf16.msrb.mxu3 %v3552_v50  ;;  %v3599_v50 = vld [vmem:[%s4602_s8 + $0x3e0] sm:$0xff] }
 0x32e   :  { %2308 = vmatpush.bf16.msra.mxu2 %v3568_v42  ;;  %v3534_v42 = vld [vmem:[%s4602_s8 + $0x1d8] sm:$0xff] }
 0x32f   :  { %2191 = vmatpush.bf16.msrb.mxu1 %v3496_v62  ;;  %v3535_v62 = vld [vmem:[%s4602_s8 + $0x1e0] sm:$0xff] }
 0x331   :  { %2283 = vmatpush.bf16.msrb.mxu3 %v3551_v41  ;;  %v3533_v41 = vld [vmem:[%s4602_s8 + $0x1d0] sm:$0xff] }
 0x332   :  { %v1082_v33 = vld [vmem:[#allocation1] sm:$0xff]  ;;  %2309 = vmatpush.bf16.msra.mxu2 %v3567_v34  ;;  %v1083_v3 = vld [vmem:[#allocation1 + $0x9] sm:$0xff]  ;;  %v1088_v38 = vld [vmem:[#allocation1 + $0x36] sm:$0xff] }
 0x333   :  { %2192 = vmatpush.bf16.msrb.mxu1 %v3495_v18  ;;  %v1114_v48 = vpack.c.bf16 %v1082_v33, %v1082_v33  ;;  %v1085_v4 = vld [vmem:[#allocation1 + $0x1b] sm:$0xff]  ;;  %v1115_v54 = vpack.c.bf16 %v1083_v3, %v1083_v3  ;;  %v1086_v37 = vld [vmem:[#allocation1 + $0x24] sm:$0xff]  ;;  %v1120_v45 = vpack.c.bf16 %v1088_v38, %v1088_v38  ;;  %v3597_v34 = vld [vmem:[%s4602_s8 + $0x3d0] sm:$0xff] }
 0x334   :  { %2249 = vmatmul.bf16.vlgmr.msra.gmra.mxu3 %v1112_v40  ;;  %v1117_v61 = vpack.c.bf16 %v1085_v4, %v1085_v4  ;;  %v1118_v13 = vpack.c.bf16 %v1086_v37, %v1086_v37  ;;  %v3598_v18 = vld [vmem:[%s4602_s8 + $0x3d8] sm:$0xff]  ;;  %v3596_v33 = vld [vmem:[%s4602_s8 + $0x3c8] sm:$0xff]  ;;  %v3595_v40 = vld [vmem:[%s4602_s8 + $0x3c0] sm:$0xff] }
 0x335   :  { %2275 = vmatmul.bf16.vlgmr.msrb.gmra.mxu2 %v1114_v48  ;;  %2284 = vmatpush.bf16.msrb.mxu3 %v3550_v46  ;;  %v3562_v46 = vld [vmem:[%s4602_s8 + $0x2b8] sm:$0xff]  ;;  %v1113_v48 = vpack.c.bf16 %v4281_v16, %v4281_v16  ;;  %v3583_v4 = vld [vmem:[%s4602_s8 + $0x360] sm:$0xff]  ;;  %v3469_v37 = vld [vmem:[%s4603_s7 + $0x10] sm:$0xff] }
 0x336   :  { %2184 = vmatmul.bf16.vlgmr.msra.gmra.mxu1 %v1107_v44  ;;  %2310 = vmatpush.bf16.msra.mxu2 %v3566_v47  ;;  %v3531_v44 = vld [vmem:[%s4602_s8 + $0x1c0] sm:$0xff]  ;;  %v3558_v16 = vld [vmem:[%s4602_s8 + $0x298] sm:$0xff] }
 0x337   :  { %2193 = vmatpush.bf16.msrb.mxu1 %v3494_v43  ;;  %v3532_v43 = vld [vmem:[%s4602_s8 + $0x1c8] sm:$0xff]  ;;  %v1089_v47 = vld [vmem:[#allocation1 + $0x3f] sm:$0xff] }
 0x339   :  { %2285 = vmatpush.bf16.msrb.mxu3 %v3549_v49  ;;  %v1121_v49 = vpack.c.bf16 %v1089_v47, %v1089_v47 }
 0x33a   :  { %2311 = vmatpush.bf16.msra.mxu2 %v3565_v52  ;;  %v3560_v52 = vld [vmem:[%s4602_s8 + $0x2a8] sm:$0xff] }
 0x33b   :  { %2194 = vmatpush.bf16.msrb.mxu1 %v3493_v32  ;;  %v3561_v32 = vld [vmem:[%s4602_s8 + $0x2b0] sm:$0xff] }
 0x33d   :  { %2286 = vmatpush.bf16.msrb.mxu3 %v3548_v55  ;;  %v3557_v55 = vld [vmem:[%s4602_s8 + $0x290] sm:$0xff] }
 0x33e   :  { %2312 = vmatpush.bf16.msra.mxu2 %v3564_v56  ;;  %v3556_v56 = vld [vmem:[%s4602_s8 + $0x288] sm:$0xff] }
 0x33f   :  { %2195 = vmatpush.bf16.msrb.mxu1 %v3492_v22  ;;  %v3559_v22 = vld [vmem:[%s4602_s8 + $0x2a0] sm:$0xff] }
 0x341   :  { %2287 = vmatpush.bf16.msrb.mxu3 %v3547_v58  ;;  %v3586_v58 = vld [vmem:[%s4602_s8 + $0x378] sm:$0xff] }
 0x342   :  { %2313 = vmatpush.bf16.msra.mxu2 %v3563_v59  ;;  %v1084_v59 = vld [vmem:[#allocation1 + $0x12] sm:$0xff] }
 0x343   :  { %2196 = vmatpush.bf16.msrb.mxu1 %v3491_v57  ;;  %v3555_v57 = vld [vmem:[%s4602_s8 + $0x280] sm:$0xff] }
 0x344   :  { %2288 = vmatmul.bf16.vlgmr.msrb.gmra.mxu3 %v1115_v54 }
 0x345   :  { %2319 = vmatpush.bf16.msra.mxu3 %v3578_v1  ;;  %2314 = vmatmul.bf16.vlgmr.msra.gmra.mxu2 %v1117_v61  ;;  %v3585_v1 = vld [vmem:[%s4602_s8 + $0x370] sm:$0xff] }
 0x346   :  { %2345 = vmatpush.bf16.msrb.mxu2 %v3594_v2  ;;  %2197 = vmatmul.bf16.vlgmr.msrb.gmra.mxu1 %v1108_v5  ;;  %v3584_v2 = vld [vmem:[%s4602_s8 + $0x368] sm:$0xff]  ;;  %v3582_v5 = vld [vmem:[%s4602_s8 + $0x358] sm:$0xff] }
 0x347   :  { %2215 = vmatpush.bf16.msra.mxu1 %v3514_v63  ;;  %v1116_v63 = vpack.c.bf16 %v1084_v59, %v1084_v59 }
 0x349   :  { %2320 = vmatpush.bf16.msra.mxu3 %v3577_v7  ;;  %v3581_v7 = vld [vmem:[%s4602_s8 + $0x350] sm:$0xff] }
 0x34a   :  { %2346 = vmatpush.bf16.msrb.mxu2 %v3593_v8  ;;  %v3580_v8 = vld [vmem:[%s4602_s8 + $0x348] sm:$0xff] }
 0x34b   :  { %2216 = vmatpush.bf16.msra.mxu1 %v3513_v6 }
 0x34d   :  { %2321 = vmatpush.bf16.msra.mxu3 %v3576_v10 }
 0x34e   :  { %2347 = vmatpush.bf16.msrb.mxu2 %v3592_v12 }
 0x34f   :  { %2217 = vmatpush.bf16.msra.mxu1 %v3512_v9 }
 0x351   :  { %2322 = vmatpush.bf16.msra.mxu3 %v3575_v17  ;;  %v3579_v17 = vld [vmem:[%s4602_s8 + $0x340] sm:$0xff] }
 0x352   :  { %2348 = vmatpush.bf16.msrb.mxu2 %v3591_v21  ;;  %v3474_v21 = vld [vmem:[%s4603_s7 + $0x38] sm:$0xff] }
 0x353   :  { %2218 = vmatpush.bf16.msra.mxu1 %v3511_v14 }
 0x355   :  { %2323 = vmatpush.bf16.msra.mxu3 %v3574_v24 }
 0x356   :  { %2349 = vmatpush.bf16.msrb.mxu2 %v3590_v11 }
 0x357   :  { %2219 = vmatpush.bf16.msra.mxu1 %v3510_v23  ;;  %v1087_v23 = vld [vmem:[#allocation1 + $0x2d] sm:$0xff] }
 0x358   :  { %v1119_v11 = vpack.c.bf16 %v1087_v23, %v1087_v23  ;;  %v3620_v23 = vld [vmem:[%s4605_s11] ss:$0 sm:$0xff] }
 0x359   :  { %2324 = vmatpush.bf16.msra.mxu3 %v3573_v26 }
 0x35a   :  { %2350 = vmatpush.bf16.msrb.mxu2 %v3589_v28 }
 0x35b   :  { %2220 = vmatpush.bf16.msra.mxu1 %v3509_v35  ;;  %v3473_v35 = vld [vmem:[%s4603_s7 + $0x30] sm:$0xff] }
 0x35d   :  { %2325 = vmatpush.bf16.msra.mxu3 %v3572_v30 }
 0x35e   :  { %2351 = vmatpush.bf16.msrb.mxu2 %v3588_v31  ;;  %v3471_v31 = vld [vmem:[%s4603_s7 + $0x20] sm:$0xff] }
 0x35f   :  { %2221 = vmatpush.bf16.msra.mxu1 %v3508_v29  ;;  %v3472_v29 = vld [vmem:[%s4603_s7 + $0x28] sm:$0xff] }
 0x361   :  { %2326 = vmatpush.bf16.msra.mxu3 %v3571_v27 }
 0x362   :  { %2352 = vmatpush.bf16.msrb.mxu2 %v3587_v36 }
 0x363   :  { %2222 = vmatpush.bf16.msra.mxu1 %v3507_v0 }
 0x364   :  { %2327 = vmatmul.bf16.vlgmr.msra.gmra.mxu3 %v1118_v13 }
 0x365   :  { %2358 = vmatpush.bf16.msrb.mxu3 %v3602_v60  ;;  %2353 = vmatmul.bf16.vlgmr.msrb.gmra.mxu2 %v1120_v45  ;;  %v3467_v45 = vld [vmem:[%s4603_s7] sm:$0xff] }
 0x366   :  { %2223 = vmatmul.bf16.vlgmr.msra.gmra.mxu1 %v1110_v25 }
 0x367   :  { %2254 = vmatpush.bf16.msrb.mxu1 %v3538_v20  ;;  %v3470_v20 = vld [vmem:[%s4603_s7 + $0x18] sm:$0xff] }
 0x369   :  { %2359 = vmatpush.bf16.msrb.mxu3 %v3601_v53 }
 0x36b   :  { %2255 = vmatpush.bf16.msrb.mxu1 %v3537_v51  ;;  %v3468_v51 = vld [vmem:[%s4603_s7 + $0x8] sm:$0xff] }
 0x36d   :  { %2360 = vmatpush.bf16.msrb.mxu3 %v3600_v15  ;;  %v1122_v15 = vpack.c.bf16 %v4098_v19, %v4098_v19  ;;  %v3610_v19 = vld [vmem:[%s4606_s10 + $0x38] sm:$0xff] }
 0x36e   :  { %2507 = vmatpush.bf16.msra.mxu2 %v3610_v19 }
 0x36f   :  { %2256 = vmatpush.bf16.msrb.mxu1 %v3536_v39 }
 0x371   :  { %2361 = vmatpush.bf16.msrb.mxu3 %v3599_v50 }
 0x373   :  { %2257 = vmatpush.bf16.msrb.mxu1 %v3535_v62 }
 0x375   :  { %2362 = vmatpush.bf16.msrb.mxu3 %v3598_v18 }
 0x377   :  { %2258 = vmatpush.bf16.msrb.mxu1 %v3534_v42 }
 0x379   :  { %2363 = vmatpush.bf16.msrb.mxu3 %v3597_v34 }
 0x37b   :  { %2259 = vmatpush.bf16.msrb.mxu1 %v3533_v41 }
 0x37d   :  { %2364 = vmatpush.bf16.msrb.mxu3 %v3596_v33 }
 0x37f   :  { %2260 = vmatpush.bf16.msrb.mxu1 %v3532_v43 }
 0x381   :  { %2365 = vmatpush.bf16.msrb.mxu3 %v3595_v40 }
 0x383   :  { %2261 = vmatpush.bf16.msrb.mxu1 %v3531_v44 }
 0x384   :  { %2366 = vmatmul.bf16.vlgmr.msrb.gmra.mxu3 %v1121_v49 }
 0x386   :  { %2262 = vmatmul.bf16.vlgmr.msrb.gmra.mxu1 %v1113_v48 }
 0x387   :  { %2293 = vmatpush.bf16.msra.mxu1 %v3562_v46 }
 0x38b   :  { %2294 = vmatpush.bf16.msra.mxu1 %v3561_v32 }
 0x38f   :  { %2295 = vmatpush.bf16.msra.mxu1 %v3560_v52 }
 0x393   :  { %2296 = vmatpush.bf16.msra.mxu1 %v3559_v22 }
 0x397   :  { %2297 = vmatpush.bf16.msra.mxu1 %v3558_v16 }
 0x39b   :  { %2298 = vmatpush.bf16.msra.mxu1 %v3557_v55 }
 0x39f   :  { %2299 = vmatpush.bf16.msra.mxu1 %v3556_v56 }
 0x3a3   :  { %2300 = vmatpush.bf16.msra.mxu1 %v3555_v57  ;;  %v2172_v3 = vpop.f32.mrf.mxu1  ;;  %v3609_v57 = vld [vmem:[%s4606_s10 + $0x30] sm:$0xff] }
 0x3a4   :  { %2508 = vmatpush.bf16.msra.mxu2 %v3609_v57 }
 0x3a6   :  { %2301 = vmatmul.bf16.vlgmr.msra.gmra.mxu1 %v1116_v63  ;;  %v3607_v63 = vld [vmem:[%s4606_s10 + $0x20] sm:$0xff] }
 0x3a7   :  { %2332 = vmatpush.bf16.msrb.mxu1 %v3586_v58  ;;  %v2211_v54 = vpop.f32.mrf.mxu3  ;;  %v3608_v58 = vld [vmem:[%s4606_s10 + $0x28] sm:$0xff] }
 0x3a8   :  { %v2237_v61 = vpop.f32.mrf.mxu2  ;;  %2509 = vmatpush.bf16.msra.mxu2 %v3608_v58 }
 0x3ab   :  { %2333 = vmatpush.bf16.msrb.mxu1 %v3585_v1  ;;  %v2174_v6 = vpop.f32.mrf.mxu1  ;;  %v3606_v1 = vld [vmem:[%s4606_s10 + $0x18] sm:$0xff] }
 0x3ac   :  { %2510 = vmatpush.bf16.msra.mxu2 %v3607_v63  ;;  %v3603_v6 = vld [vmem:[%s4606_s10] sm:$0xff] }
 0x3af   :  { %2334 = vmatpush.bf16.msrb.mxu1 %v3584_v2  ;;  %v2213_v9 = vpop.f32.mrf.mxu3  ;;  %v3605_v2 = vld [vmem:[%s4606_s10 + $0x10] sm:$0xff] }
 0x3b0   :  { %v2239_v10 = vpop.f32.mrf.mxu2  ;;  %2511 = vmatpush.bf16.msra.mxu2 %v3606_v1 }
 0x3b3   :  { %2335 = vmatpush.bf16.msrb.mxu1 %v3583_v4  ;;  %v2185_v12 = vpop.f32.mrf.mxu1 }
 0x3b4   :  { %v2186_v14 = vadd.f32 %v2185_v12, %v2172_v3  ;;  %2512 = vmatpush.bf16.msra.mxu2 %v3605_v2 }
 0x3b7   :  { %2336 = vmatpush.bf16.msrb.mxu1 %v3582_v5  ;;  %v2250_v24 = vpop.f32.mrf.mxu3 }
 0x3b8   :  { %v2276_v26 = vpop.f32.mrf.mxu2 }
 0x3bb   :  { %2337 = vmatpush.bf16.msrb.mxu1 %v3581_v7  ;;  %v2187_v28 = vpop.f32.mrf.mxu1 }
 0x3bf   :  { %2338 = vmatpush.bf16.msrb.mxu1 %v3580_v8  ;;  %v2252_v30 = vpop.f32.mrf.mxu3  ;;  %v3619_v8 = vld [vmem:[%s4604_s9] ss:$0 sm:$0xff] }
 0x3c0   :  { %v2278_v0 = vpop.f32.mrf.mxu2 }
 0x3c3   :  { %2339 = vmatpush.bf16.msrb.mxu1 %v3579_v17  ;;  %v2198_v27 = vpop.f32.mrf.mxu1 }
 0x3c4   :  { %v2199_v36 = vadd.f32 %v2198_v27, %v2186_v14 }
 0x3c6   :  { %2340 = vmatmul.bf16.vlgmr.msrb.gmra.mxu1 %v1119_v11  ;;  %v2212_v60 = vadd.f32 %v2211_v54, %v2199_v36  ;;  %v3604_v54 = vld [vmem:[%s4606_s10 + $0x8] sm:$0xff] }
 0x3c7   :  { %2419 = vmatpush.bf16.msra.mxu1 %v3474_v21  ;;  %v2289_v38 = vpop.f32.mrf.mxu3  ;;  %2513 = vmatpush.bf16.msra.mxu2 %v3604_v54 }
 0x3c8   :  { %v2315_v25 = vpop.f32.mrf.mxu2 }
 0x3cb   :  { %2420 = vmatpush.bf16.msra.mxu1 %v3473_v35  ;;  %v2200_v13 = vpop.f32.mrf.mxu1  ;;  %2514 = vmatpush.bf16.msra.mxu2 %v3603_v6 }
 0x3cf   :  { %2421 = vmatpush.bf16.msra.mxu1 %v3472_v29  ;;  %v2291_v53 = vpop.f32.mrf.mxu3 }
 0x3d0   :  { %v2317_v39 = vpop.f32.mrf.mxu2 }
 0x3d3   :  { %2422 = vmatpush.bf16.msra.mxu1 %v3471_v31 }
 0x3d7   :  { %2423 = vmatpush.bf16.msra.mxu1 %v3470_v20 }
 0x3db   :  { %2424 = vmatpush.bf16.msra.mxu1 %v3469_v37 }
 0x3df   :  { %2425 = vmatpush.bf16.msra.mxu1 %v3468_v51 }
 0x3e3   :  { %2426 = vmatpush.bf16.msra.mxu1 %v3467_v45  ;;  %v2224_v62 = vpop.f32.mrf.mxu1 }
 0x3e4   :  { %v2225_v50 = vadd.f32 %v2224_v62, %v2212_v60 }
 0x3e6   :  { %2427 = vmatmul.bf16.vlgmr.msra.gmra.mxu1 %v1122_v15  ;;  %v2238_v42 = vadd.f32 %v2237_v61, %v2225_v50 }
 0x3e7   :  { %v2328_v41 = vpop.f32.mrf.mxu3 }
 0x3e8   :  { %v2251_v18 = vadd.f32 %v2250_v24, %v2238_v42  ;;  %v2354_v34 = vpop.f32.mrf.mxu2 }
 0x3eb   :  { %v2226_v43 = vpop.f32.mrf.mxu1 }
 0x3ef   :  { %v2330_v33 = vpop.f32.mrf.mxu3 }
 0x3f0   :  { %v2356_v44 = vpop.f32.mrf.mxu2 }
 0x403   :  { %v2263_v40 = vpop.f32.mrf.mxu1 }
 0x404   :  { %v2264_v46 = vadd.f32 %v2263_v40, %v2251_v18 }
 0x406   :  { %v2277_v47 = vadd.f32 %v2276_v26, %v2264_v46 }
 0x407   :  { %v2367_v32 = vpop.f32.mrf.mxu3 }
 0x408   :  { %v2290_v48 = vadd.f32 %v2289_v38, %v2277_v47 }
 0x40b   :  { %v2265_v49 = vpop.f32.mrf.mxu1 }
 0x40f   :  { %v2369_v52 = vpop.f32.mrf.mxu3 }
 0x423   :  { %v2302_v22 = vpop.f32.mrf.mxu1 }
 0x424   :  { %v2303_v16 = vadd.f32 %v2302_v22, %v2290_v48 }
 0x426   :  { %v2316_v55 = vadd.f32 %v2315_v25, %v2303_v16 }
 0x428   :  { %v2329_v56 = vadd.f32 %v2328_v41, %v2316_v55 }
 0x42b   :  { %v2304_v59 = vpop.f32.mrf.mxu1 }
 0x443   :  { %v2341_v3 = vpop.f32.mrf.mxu1 }
 0x444   :  { %v2342_v4 = vadd.f32 %v2341_v3, %v2329_v56 }
 0x446   :  { %v2355_v5 = vadd.f32 %v2354_v34, %v2342_v4 }
 0x448   :  { %v2368_v61 = vadd.f32 %v2367_v32, %v2355_v5 }
 0x44b   :  { %v2343_v7 = vpop.f32.mrf.mxu1 }
 0x463   :  { %v2428_v9 = vpop.f32.mrf.mxu1 }
 0x464   :  { %v2429_v10 = vadd.f32 %v2428_v9, %v2368_v61 }
 0x466   :  { %v2436_v12 = vadd.f32 %v3619_v8, %v2429_v10 }
 0x468   :  { %v2437_v14 = vmax.f32 %v2436_v12, 0.0 }
 0x46a   :  { %v2438_v17 = vpack.c.bf16 %v2437_v14, %v2437_v14 }
 0x46b   :  { %v2430_v21 = vpop.f32.mrf.mxu1 }
 0x46c   :  { %2515 = vmatmul.bf16.vlgmr.msra.gmra.mxu2 %v2438_v17 }
 0x4ef   :  { %v2516_v24 = vpop.f32.mrf.mxu2 }
 0x4f0   :  { %v2517_v11 = vadd.f32 %v3620_v23, %v2516_v24 }
 0x4f2   :  { %v2520_v35 = vand.u32 2147483647, %v2517_v11  ;;  %vm2526_vm2 = vcmp.ge.f32.partialorder %v2517_v11, 0.0 }
 0x4f4   :  { %v2521_v26 = vsub.f32 0.0, %v2520_v35 }
 0x4f6   :  { %v2522_v28 = vmul.f32 1.442695, %v2521_v26 }
 0x4f7   :  { %v2518_v29 = vpop.f32.mrf.mxu2 }
 0x4f8   :  { %3621 = vpow2.f32 %v2522_v28 }
 0x4fe   :  { %v3622_v30 = vpop.eup %3621 }
 0x4ff   :  { %v2524_v31 = vadd.f32 1.0, %v3622_v30 }
 0x501   :  { %3623 = vrcp.f32 %v2524_v31 }
 0x507   :  { %v3624_v0 = vpop.eup %3623 }
 0x508   :  { %v2527_v27 = vmul.f32 %v3624_v0, %v3622_v30 }
 0x50a   :  { %v2528_v36 = vsel %vm2526_vm2, %v3624_v0, %v2527_v27 }
 0x50b   :  { %v2529_v20 = vmax.f32 %v2528_v36, 0.0 }
 0x50d   :  { %v2530_v60 = vmin.f32 %v2529_v20, 1.0 }
 0x50f   :  { %2531 = vst [vmem:[%s4607_s12] sm:$0xff] %v2530_v60 }

</bundles_post_ra>
